<compile_context>
chip_gen: v7x
topology: tpu7x:2x2x1
jax: 0.10.0
libtpu: 0.0.40
codegen_flags: <defaults>
</compile_context>

<pallas_src>
import functools

import jax
import jax.numpy as jnp
from jax import lax
from jax.experimental import pallas as pl
from jax.experimental.pallas import tpu as pltpu


def sm_decoder_kernel(ts, bt, H, V, use_sampling, tf_ref, *refs):
    if use_sampling:
        (latent_ref, w_lh_ref, b_lh_ref, x_tf_ref, w_ih_ref, w_hh_ref, b_g_ref,
         w_out_ref, b_out_ref, emb_ref, gumbel_ref,
         out_ref, h_scr, c_scr, x_scr) = refs
    else:
        (latent_ref, w_lh_ref, b_lh_ref, x_tf_ref, w_ih_ref, w_hh_ref, b_g_ref,
         w_out_ref, b_out_ref,
         out_ref, h_scr, c_scr, x_scr) = refs
        emb_ref = gumbel_ref = None

    step_tile = pl.program_id(1)
    t0 = step_tile * ts

    # h_0 = latent_to_hidden(z); c_0 = 0  (once per batch tile, at the first step tile).
    @pl.when(step_tile == 0)
    def _():
        h_scr[...] = (jnp.dot(latent_ref[...], w_lh_ref[...],
                              preferred_element_type=jnp.float32) + b_lh_ref[...])
        c_scr[...] = jnp.zeros_like(c_scr)

    # Hoisted weight loads / bias broadcasts (once per step tile, not per step).
    w_ih = w_ih_ref[...]
    w_hh = w_hh_ref[...]
    w_out = w_out_ref[...]
    b_g = jnp.broadcast_to(b_g_ref[...], (bt, 4 * H))
    b_out = jnp.broadcast_to(b_out_ref[...], (bt, V))
    emb = emb_ref[...] if use_sampling else None

    def step_body(s, carry):
        h, c = carry                                             # f32 carries
        t = t0 + s                                               # global step index

        # Teacher-forced input for this step (single conditional store; when the
        # input is sampled, x_scr already holds last step's sampled embedding).
        @pl.when(tf_ref[t] != 0)
        def _():
            x_scr[...] = x_tf_ref[s]

        x = x_scr[...]                                           # (bt, E) bf16
        gates = (jnp.dot(x, w_ih, preferred_element_type=jnp.float32)
                 + jnp.dot(h.astype(jnp.bfloat16), w_hh,
                           preferred_element_type=jnp.float32)
                 + b_g)
        # PyTorch LSTM gate order: i, f, g, o.  Sub-128-lane gate slices are
        # accepted at this tiny H; at production H is a multiple of 128.
        i_g = jax.nn.sigmoid(gates[:, 0 * H:1 * H])
        f_g = jax.nn.sigmoid(gates[:, 1 * H:2 * H])
        g_g = jnp.tanh(gates[:, 2 * H:3 * H])
        o_g = jax.nn.sigmoid(gates[:, 3 * H:4 * H])
        c_new = f_g * c + i_g * g_g
        h_new = o_g * jnp.tanh(c_new)

        logits = (jnp.dot(h_new.astype(jnp.bfloat16), w_out,
                          preferred_element_type=jnp.float32) + b_out)
        out_ref[s] = logits                                      # lane-dense (bt, V) slab

        if use_sampling:
            @pl.when(tf_ref[t + 1] == 0)                         # next input is sampled
            def _():
                # torch.multinomial(softmax(logits)) == Gumbel-max on logits
                # (equal in distribution; ties broken toward largest index).
                scores = logits + gumbel_ref[s]
                col = lax.broadcasted_iota(jnp.int32, (bt, V), 1)
                mx = jnp.max(scores, axis=1, keepdims=True)
                idx = jnp.max(jnp.where(scores >= mx, col, -1), axis=1, keepdims=True)
                onehot = (col == idx).astype(jnp.bfloat16)
                x_scr[...] = jnp.dot(onehot, emb,
                                     preferred_element_type=jnp.float32
                                     ).astype(jnp.bfloat16)

        return h_new, c_new

    h_f, c_f = lax.fori_loop(0, ts, step_body,
                             (h_scr[...], c_scr[...]), unroll=True)
    h_scr[...] = h_f                                             # carry to next step tile
    c_scr[...] = c_f


def prepare_params(params, weight_dtype=jnp.bfloat16):
    """One-time parameter prep (transposes, bias fusion, bf16 weight cast)."""
    emb, w_lh, b_lh, w_ih, w_hh, b_ih, b_hh, w_out, b_out = params
    return {
        "emb": emb.astype(weight_dtype),                          # (V, E)
        "w_lh_t": w_lh.T.astype(weight_dtype),                    # (L, H)
        "b_lh": b_lh.reshape(1, -1).astype(jnp.float32),          # (1, H)
        "w_ih_t": w_ih.T.astype(weight_dtype),                    # (E, 4H)
        "w_hh_t": w_hh.T.astype(weight_dtype),                    # (H, 4H)
        "b_g": (b_ih + b_hh).reshape(1, -1).astype(jnp.float32),  # (1, 4H)
        "w_out_t": w_out.T.astype(weight_dtype),                  # (H, V)
        "b_out": b_out.reshape(1, -1).astype(jnp.float32),        # (1, V)
    }


def sm_decoder_forward(prep, latent, target_tokens, rng_key,
                       teacher_forcing_ratio=0.5, step_tile=None, batch_tile=None):
    B, T = target_tokens.shape
    V, E = prep["emb"].shape
    L, H = prep["w_lh_t"].shape
    steps = T - 1
    assert steps >= 1

    bt = B if batch_tile is None else batch_tile
    assert B % bt == 0
    ts = min(steps, 8) if step_tile is None else step_tile
    n_step_tiles = pl.cdiv(steps, ts)
    padded_steps = n_step_tiles * ts

    use_sampling = (float(teacher_forcing_ratio) < 1.0) and steps > 1

    # All randomness precomputed in the wrapper (single stream, off the per-step path).
    # tf_in[t] == 1  <=>  step t's INPUT is teacher forced (t == 0 always; otherwise
    # the coin drawn after step t-1's logits).  Padded/trailing entries stay 1 so
    # padded steps never take the sampling branch.
    k_tf, k_g = jax.random.split(rng_key)
    tf_in = jnp.ones((padded_steps + 1,), jnp.int32)
    if use_sampling:
        coins = (jax.random.uniform(k_tf, (steps - 1,)) <
                 jnp.float32(teacher_forcing_ratio)).astype(jnp.int32)
        tf_in = tf_in.at[1:steps].set(coins)

    # Teacher-forced input embeddings, laid out (steps, B, E), padded along steps.
    x_tf = jnp.transpose(prep["emb"][target_tokens[:, :steps].astype(jnp.int32)],
                         (1, 0, 2))
    if padded_steps > steps:
        x_tf = jnp.pad(x_tf, ((0, padded_steps - steps), (0, 0), (0, 0)))

    latent = latent.astype(prep["w_lh_t"].dtype)

    kernel = functools.partial(sm_decoder_kernel, ts, bt, H, V, use_sampling)

    const2 = lambda b, i, tf: (0, 0)
    in_specs = [
        pl.BlockSpec((bt, L), lambda b, i, tf: (b, 0)),            # latent
        pl.BlockSpec((L, H), const2),                              # W_lh^T
        pl.BlockSpec((1, H), const2),                              # b_lh
        pl.BlockSpec((ts, bt, E), lambda b, i, tf: (i, b, 0)),     # teacher-forced embeddings
        pl.BlockSpec((E, 4 * H), const2),                          # W_ih^T
        pl.BlockSpec((H, 4 * H), const2),                          # W_hh^T
        pl.BlockSpec((1, 4 * H), const2),                          # b_ih + b_hh
        pl.BlockSpec((H, V), const2),                              # W_out^T
        pl.BlockSpec((1, V), const2),                              # b_out
    ]
    args = [tf_in, latent, prep["w_lh_t"], prep["b_lh"], x_tf,
            prep["w_ih_t"], prep["w_hh_t"], prep["b_g"],
            prep["w_out_t"], prep["b_out"]]

    if use_sampling:
        gumbel = jax.random.gumbel(k_g, (padded_steps, B, V), jnp.float32)
        in_specs += [
            pl.BlockSpec((V, E), const2),                          # embedding table
            pl.BlockSpec((ts, bt, V), lambda b, i, tf: (i, b, 0)),  # Gumbel noise
        ]
        args += [prep["emb"], gumbel]

    out = pl.pallas_call(
        kernel,
        out_shape=jax.ShapeDtypeStruct((padded_steps, B, V), jnp.float32),
        grid_spec=pltpu.PrefetchScalarGridSpec(
            num_scalar_prefetch=1,                                 # tf_in -> SMEM
            grid=(B // bt, n_step_tiles),                          # (batch tiles, step tiles)
            in_specs=in_specs,
            out_specs=pl.BlockSpec((ts, bt, V), lambda b, i, tf: (i, b, 0)),
            scratch_shapes=[pltpu.VMEM((bt, H), jnp.float32),      # h carry
                            pltpu.VMEM((bt, H), jnp.float32),      # c carry
                            pltpu.VMEM((bt, E), jnp.bfloat16)],    # current input embedding
        ),
        compiler_params=pltpu.CompilerParams(
            dimension_semantics=("parallel", "arbitrary")),
    )(*args)

    return jnp.transpose(out[:steps], (1, 0, 2))                   # (B, steps, V)


def init_params(key, vocab_size, embedding_dim, hidden_dim, latent_dim):
    ks = jax.random.split(key, 9)
    s = 0.1
    emb = jax.random.normal(ks[0], (vocab_size, embedding_dim), jnp.float32) * s
    w_lh = jax.random.normal(ks[1], (hidden_dim, latent_dim), jnp.float32) * s
    b_lh = jax.random.normal(ks[2], (hidden_dim,), jnp.float32) * s
    w_ih = jax.random.normal(ks[3], (4 * hidden_dim, embedding_dim), jnp.float32) * s
    w_hh = jax.random.normal(ks[4], (4 * hidden_dim, hidden_dim), jnp.float32) * s
    b_ih = jax.random.normal(ks[5], (4 * hidden_dim,), jnp.float32) * s
    b_hh = jax.random.normal(ks[6], (4 * hidden_dim,), jnp.float32) * s
    w_out = jax.random.normal(ks[7], (vocab_size, hidden_dim), jnp.float32) * s
    b_out = jax.random.normal(ks[8], (vocab_size,), jnp.float32) * s
    return (emb, w_lh, b_lh, w_ih, w_hh, b_ih, b_hh, w_out, b_out)


def reference_teacher_forced(prep, latent, targets):
    """Pure-JAX reference of the teacher-forced forward, mirroring the kernel's
    bf16-weight / f32-accumulation numerics."""
    B, T = targets.shape
    H = prep["w_lh_t"].shape[1]
    f32 = jnp.float32
    h = (jnp.dot(latent.astype(prep["w_lh_t"].dtype), prep["w_lh_t"],
                 preferred_element_type=f32) + prep["b_lh"])
    c = jnp.zeros_like(h)
    outs = []
    for t in range(T - 1):
        x = prep["emb"][targets[:, t]]
        gates = (jnp.dot(x, prep["w_ih_t"], preferred_element_type=f32)
                 + jnp.dot(h.astype(jnp.bfloat16), prep["w_hh_t"],
                           preferred_element_type=f32)
                 + prep["b_g"])
        i_g = jax.nn.sigmoid(gates[:, 0 * H:1 * H])
        f_g = jax.nn.sigmoid(gates[:, 1 * H:2 * H])
        g_g = jnp.tanh(gates[:, 2 * H:3 * H])
        o_g = jax.nn.sigmoid(gates[:, 3 * H:4 * H])
        c = f_g * c + i_g * g_g
        h = o_g * jnp.tanh(c)
        outs.append(jnp.dot(h.astype(jnp.bfloat16), prep["w_out_t"],
                            preferred_element_type=f32) + prep["b_out"])
    return jnp.stack(outs, axis=1)


if __name__ == "__main__":
    vocab_size, embedding_dim, hidden_dim, latent_dim = 16, 16, 32, 8
    B, T = 2, 8

    key = jax.random.PRNGKey(0)
    kp, kl, kt, kr1, kr2 = jax.random.split(key, 5)
    params = init_params(kp, vocab_size, embedding_dim, hidden_dim, latent_dim)
    prep = prepare_params(params)
    latent = jax.random.normal(kl, (B, latent_dim), jnp.float32)
    targets = jax.random.randint(kt, (B, T), 0, vocab_size, dtype=jnp.int32)

    # Stochastic run matching the default PyTorch forward (teacher_forcing_ratio=0.5),
    # using a multi-tile step grid (exercises padding + cross-tile h/c/x carry).
    out = sm_decoder_forward(prep, latent, targets, kr1,
                             teacher_forcing_ratio=0.5, step_tile=4)
    out = jax.block_until_ready(out)
    assert out.shape == (B, T - 1, vocab_size)
    assert bool(jnp.all(jnp.isfinite(out)))

    # Deterministic check: ratio=1.0 forces teacher forcing -> must match reference.
    ref = reference_teacher_forced(prep, latent, targets)
    for st in (4, None):   # both the padded multi-tile and the single-tile paths
        out_tf = jax.block_until_ready(
            sm_decoder_forward(prep, latent, targets, kr2,
                               teacher_forcing_ratio=1.0, step_tile=st))
        assert jnp.allclose(out_tf, ref, atol=1e-2, rtol=1e-2), \
            float(jnp.max(jnp.abs(out_tf - ref)))

    print("KERNEL_OK")
</pallas_src>

<mosaic_0001>
module attributes {stable_mosaic.version = 11 : i64} {
  func.func @sm_decoder_kernel(%arg0: i32, %arg1: i32, %arg2: memref<9xi32, #tpu.memory_space<smem>>, %arg3: memref<2x8xbf16, #tpu.memory_space<vmem>>, %arg4: memref<8x32xbf16, #tpu.memory_space<vmem>>, %arg5: memref<1x32xf32, #tpu.memory_space<vmem>>, %arg6: memref<4x2x16xbf16, #tpu.memory_space<vmem>>, %arg7: memref<16x128xbf16, #tpu.memory_space<vmem>>, %arg8: memref<32x128xbf16, #tpu.memory_space<vmem>>, %arg9: memref<1x128xf32, #tpu.memory_space<vmem>>, %arg10: memref<32x16xbf16, #tpu.memory_space<vmem>>, %arg11: memref<1x16xf32, #tpu.memory_space<vmem>>, %arg12: memref<16x16xbf16, #tpu.memory_space<vmem>>, %arg13: memref<4x2x16xf32, #tpu.memory_space<vmem>>, %arg14: memref<4x2x16xf32, #tpu.memory_space<vmem>>, %arg15: memref<2x32xf32, #tpu.memory_space<vmem>>, %arg16: memref<2x32xf32, #tpu.memory_space<vmem>>, %arg17: memref<2x16xbf16, #tpu.memory_space<vmem>>) attributes {dimension_semantics = [#tpu.dimension_semantics<parallel>, #tpu.dimension_semantics<arbitrary>], iteration_bounds = array<i64: 1, 2>, scalar_prefetch = 1 : i64, scratch_operands = 3 : i64, tpu.core_type = #tpu.core_type<tc>, window_params = [{transform_indices = @transform_0, window_bounds = array<i64: 2, 8>}, {pipeline_mode = #tpu.pipeline_mode<synchronous>, transform_indices = @transform_1, window_bounds = array<i64: 8, 32>}, {pipeline_mode = #tpu.pipeline_mode<synchronous>, transform_indices = @transform_2, window_bounds = array<i64: 1, 32>}, {transform_indices = @transform_3, window_bounds = array<i64: 4, 2, 16>}, {pipeline_mode = #tpu.pipeline_mode<synchronous>, transform_indices = @transform_4, window_bounds = array<i64: 16, 128>}, {pipeline_mode = #tpu.pipeline_mode<synchronous>, transform_indices = @transform_5, window_bounds = array<i64: 32, 128>}, {pipeline_mode = #tpu.pipeline_mode<synchronous>, transform_indices = @transform_6, window_bounds = array<i64: 1, 128>}, {pipeline_mode = #tpu.pipeline_mode<synchronous>, transform_indices = @transform_7, window_bounds = array<i64: 32, 16>}, {pipeline_mode = #tpu.pipeline_mode<synchronous>, transform_indices = @transform_8, window_bounds = array<i64: 1, 16>}, {pipeline_mode = #tpu.pipeline_mode<synchronous>, transform_indices = @transform_9, window_bounds = array<i64: 16, 16>}, {transform_indices = @transform_10, window_bounds = array<i64: 4, 2, 16>}, {transform_indices = @transform_11, window_bounds = array<i64: 4, 2, 16>}]} {
    %c4_i32 = arith.constant 4 : i32
    %0 = arith.muli %arg1, %c4_i32 : i32
    %c0_i32 = arith.constant 0 : i32
    %1 = arith.cmpi eq, %arg1, %c0_i32 : i32
    %2 = arith.extui %1 : i1 to i32
    %c0_i32_0 = arith.constant 0 : i32
    %3 = arith.cmpi ne, %2, %c0_i32_0 : i32
    scf.if %3 {
      %c0_81 = arith.constant 0 : index
      %c0_82 = arith.constant 0 : index
      %218 = vector.load %arg3[%c0_81, %c0_82] : memref<2x8xbf16, #tpu.memory_space<vmem>>, vector<2x8xbf16>
      %c0_83 = arith.constant 0 : index
      %c0_84 = arith.constant 0 : index
      %219 = vector.load %arg4[%c0_83, %c0_84] : memref<8x32xbf16, #tpu.memory_space<vmem>>, vector<8x32xbf16>
      %cst_85 = arith.constant dense<0.000000e+00> : vector<2x32xf32>
      %220 = tpu.matmul %218, %219, %cst_85 {dimension_numbers = #tpu.dot_dimension_numbers<[1], [0], [0], [1], [0, 0, 1, 1], [], []>} : vector<2x8xbf16>, vector<8x32xbf16>, vector<2x32xf32> -> vector<2x32xf32>
      %c0_86 = arith.constant 0 : index
      %c0_87 = arith.constant 0 : index
      %221 = vector.load %arg5[%c0_86, %c0_87] : memref<1x32xf32, #tpu.memory_space<vmem>>, vector<1x32xf32>
      %222 = vector.broadcast %221 : vector<1x32xf32> to vector<2x32xf32>
      %223 = arith.addf %220, %222 : vector<2x32xf32>
      %c0_88 = arith.constant 0 : index
      %c0_89 = arith.constant 0 : index
      %224 = vector.load %arg15[%c0_88, %c0_89] : memref<2x32xf32, #tpu.memory_space<vmem>>, vector<2x32xf32>
      tpu.vector_store %arg15[%c0_88, %c0_89], %223 {strides = array<i32>} : memref<2x32xf32, #tpu.memory_space<vmem>>, vector<2x32xf32>,
      %cst_90 = arith.constant 0.000000e+00 : f32
      %225 = vector.broadcast %cst_90 : f32 to vector<2x32xf32>
      %c0_91 = arith.constant 0 : index
      %c0_92 = arith.constant 0 : index
      %226 = vector.load %arg16[%c0_91, %c0_92] : memref<2x32xf32, #tpu.memory_space<vmem>>, vector<2x32xf32>
      tpu.vector_store %arg16[%c0_91, %c0_92], %225 {strides = array<i32>} : memref<2x32xf32, #tpu.memory_space<vmem>>, vector<2x32xf32>,
    } else {
    }
    %c0 = arith.constant 0 : index
    %c0_1 = arith.constant 0 : index
    %4 = vector.load %arg7[%c0, %c0_1] : memref<16x128xbf16, #tpu.memory_space<vmem>>, vector<16x128xbf16>
    %c0_2 = arith.constant 0 : index
    %c0_3 = arith.constant 0 : index
    %5 = vector.load %arg8[%c0_2, %c0_3] : memref<32x128xbf16, #tpu.memory_space<vmem>>, vector<32x128xbf16>
    %c0_4 = arith.constant 0 : index
    %c0_5 = arith.constant 0 : index
    %6 = vector.load %arg10[%c0_4, %c0_5] : memref<32x16xbf16, #tpu.memory_space<vmem>>, vector<32x16xbf16>
    %c0_6 = arith.constant 0 : index
    %c0_7 = arith.constant 0 : index
    %7 = vector.load %arg9[%c0_6, %c0_7] : memref<1x128xf32, #tpu.memory_space<vmem>>, vector<1x128xf32>
    %8 = vector.shape_cast %7 : vector<1x128xf32> to vector<1x128xf32>
    %9 = vector.broadcast %8 : vector<1x128xf32> to vector<2x128xf32>
    %c0_8 = arith.constant 0 : index
    %c0_9 = arith.constant 0 : index
    %10 = vector.load %arg11[%c0_8, %c0_9] : memref<1x16xf32, #tpu.memory_space<vmem>>, vector<1x16xf32>
    %11 = vector.shape_cast %10 : vector<1x16xf32> to vector<1x16xf32>
    %12 = vector.broadcast %11 : vector<1x16xf32> to vector<2x16xf32>
    %c0_10 = arith.constant 0 : index
    %c0_11 = arith.constant 0 : index
    %13 = vector.load %arg12[%c0_10, %c0_11] : memref<16x16xbf16, #tpu.memory_space<vmem>>, vector<16x16xbf16>
    %c0_12 = arith.constant 0 : index
    %c0_13 = arith.constant 0 : index
    %14 = vector.load %arg15[%c0_12, %c0_13] : memref<2x32xf32, #tpu.memory_space<vmem>>, vector<2x32xf32>
    %c0_14 = arith.constant 0 : index
    %c0_15 = arith.constant 0 : index
    %15 = vector.load %arg16[%c0_14, %c0_15] : memref<2x32xf32, #tpu.memory_space<vmem>>, vector<2x32xf32>
    %c0_i32_16 = arith.constant 0 : i32
    %16 = arith.addi %0, %c0_i32_16 : i32
    %17 = arith.index_cast %16 : i32 to index
    %18 = memref.load %arg2[%17] : memref<9xi32, #tpu.memory_space<smem>>
    %c0_i32_17 = arith.constant 0 : i32
    %19 = arith.cmpi ne, %18, %c0_i32_17 : i32
    %20 = arith.extui %19 : i1 to i32
    %c0_i32_18 = arith.constant 0 : i32
    %21 = arith.cmpi ne, %20, %c0_i32_18 : i32
    scf.if %21 {
      %218 = arith.index_cast %c0_i32_16 : i32 to index
      %c0_81 = arith.constant 0 : index
      %c0_82 = arith.constant 0 : index
      %219 = vector.load %arg6[%218, %c0_81, %c0_82] : memref<4x2x16xbf16, #tpu.memory_space<vmem>>, vector<1x2x16xbf16>
      %220 = vector.shape_cast %219 : vector<1x2x16xbf16> to vector<2x16xbf16>
      %c0_83 = arith.constant 0 : index
      %c0_84 = arith.constant 0 : index
      %221 = vector.load %arg17[%c0_83, %c0_84] : memref<2x16xbf16, #tpu.memory_space<vmem>>, vector<2x16xbf16>
      tpu.vector_store %arg17[%c0_83, %c0_84], %220 {strides = array<i32>} : memref<2x16xbf16, #tpu.memory_space<vmem>>, vector<2x16xbf16>,
    } else {
    }
    %c0_19 = arith.constant 0 : index
    %c0_20 = arith.constant 0 : index
    %22 = vector.load %arg17[%c0_19, %c0_20] : memref<2x16xbf16, #tpu.memory_space<vmem>>, vector<2x16xbf16>
    %cst = arith.constant dense<0.000000e+00> : vector<2x128xf32>
    %23 = tpu.matmul %22, %4, %cst {dimension_numbers = #tpu.dot_dimension_numbers<[1], [0], [0], [1], [0, 0, 1, 1], [], []>} : vector<2x16xbf16>, vector<16x128xbf16>, vector<2x128xf32> -> vector<2x128xf32>
    %24 = arith.truncf %14 : vector<2x32xf32> to vector<2x32xbf16>
    %cst_21 = arith.constant dense<0.000000e+00> : vector<2x128xf32>
    %25 = tpu.matmul %24, %5, %cst_21 {dimension_numbers = #tpu.dot_dimension_numbers<[1], [0], [0], [1], [0, 0, 1, 1], [], []>} : vector<2x32xbf16>, vector<32x128xbf16>, vector<2x128xf32> -> vector<2x128xf32>
    %26 = arith.addf %23, %25 : vector<2x128xf32>
    %27 = arith.addf %26, %9 : vector<2x128xf32>
    %28 = vector.extract_strided_slice %27 {offsets = [0, 0], sizes = [2, 32], strides = [1, 1]} : vector<2x128xf32> to vector<2x32xf32>
    %29 = arith.negf %28 : vector<2x32xf32>
    %30 = math.exp %29 : vector<2x32xf32>
    %cst_22 = arith.constant 1.000000e+00 : f32
    %31 = vector.broadcast %cst_22 : f32 to vector<2x32xf32>
    %32 = arith.addf %31, %30 : vector<2x32xf32>
    %33 = arith.divf %31, %32 : vector<2x32xf32>
    %34 = vector.extract_strided_slice %27 {offsets = [0, 32], sizes = [2, 32], strides = [1, 1]} : vector<2x128xf32> to vector<2x32xf32>
    %35 = arith.negf %34 : vector<2x32xf32>
    %36 = math.exp %35 : vector<2x32xf32>
    %cst_23 = arith.constant 1.000000e+00 : f32
    %37 = vector.broadcast %cst_23 : f32 to vector<2x32xf32>
    %38 = arith.addf %37, %36 : vector<2x32xf32>
    %39 = arith.divf %37, %38 : vector<2x32xf32>
    %40 = vector.extract_strided_slice %27 {offsets = [0, 64], sizes = [2, 32], strides = [1, 1]} : vector<2x128xf32> to vector<2x32xf32>
    %41 = math.tanh %40 : vector<2x32xf32>
    %42 = vector.extract_strided_slice %27 {offsets = [0, 96], sizes = [2, 32], strides = [1, 1]} : vector<2x128xf32> to vector<2x32xf32>
    %43 = arith.negf %42 : vector<2x32xf32>
    %44 = math.exp %43 : vector<2x32xf32>
    %cst_24 = arith.constant 1.000000e+00 : f32
    %45 = vector.broadcast %cst_24 : f32 to vector<2x32xf32>
    %46 = arith.addf %45, %44 : vector<2x32xf32>
    %47 = arith.divf %45, %46 : vector<2x32xf32>
    %48 = arith.mulf %39, %15 : vector<2x32xf32>
    %49 = arith.mulf %33, %41 : vector<2x32xf32>
    %50 = arith.addf %48, %49 : vector<2x32xf32>
    %51 = math.tanh %50 : vector<2x32xf32>
    %52 = arith.mulf %47, %51 : vector<2x32xf32>
    %53 = arith.truncf %52 : vector<2x32xf32> to vector<2x32xbf16>
    %cst_25 = arith.constant dense<0.000000e+00> : vector<2x16xf32>
    %54 = tpu.matmul %53, %6, %cst_25 {dimension_numbers = #tpu.dot_dimension_numbers<[1], [0], [0], [1], [0, 0, 1, 1], [], []>} : vector<2x32xbf16>, vector<32x16xbf16>, vector<2x16xf32> -> vector<2x16xf32>
    %55 = arith.addf %54, %12 : vector<2x16xf32>
    %56 = arith.index_cast %c0_i32_16 : i32 to index
    %c0_26 = arith.constant 0 : index
    %c0_27 = arith.constant 0 : index
    %57 = vector.load %arg14[%56, %c0_26, %c0_27] : memref<4x2x16xf32, #tpu.memory_space<vmem>>, vector<1x2x16xf32>
    %58 = vector.shape_cast %57 : vector<1x2x16xf32> to vector<2x16xf32>
    %59 = vector.shape_cast %55 : vector<2x16xf32> to vector<1x2x16xf32>
    tpu.vector_store %arg14[%56, %c0_26, %c0_27], %59 {strides = array<i32>} : memref<4x2x16xf32, #tpu.memory_space<vmem>>, vector<1x2x16xf32>,
    %c1_i32 = arith.constant 1 : i32
    %60 = arith.addi %16, %c1_i32 : i32
    %61 = arith.index_cast %60 : i32 to index
    %62 = memref.load %arg2[%61] : memref<9xi32, #tpu.memory_space<smem>>
    %c0_i32_28 = arith.constant 0 : i32
    %63 = arith.cmpi eq, %62, %c0_i32_28 : i32
    %64 = arith.extui %63 : i1 to i32
    %c0_i32_29 = arith.constant 0 : i32
    %65 = arith.cmpi ne, %64, %c0_i32_29 : i32
    scf.if %65 {
      %218 = arith.index_cast %c0_i32_16 : i32 to index
      %c0_81 = arith.constant 0 : index
      %c0_82 = arith.constant 0 : index
      %219 = vector.load %arg13[%218, %c0_81, %c0_82] : memref<4x2x16xf32, #tpu.memory_space<vmem>>, vector<1x2x16xf32>
      %220 = vector.shape_cast %219 : vector<1x2x16xf32> to vector<2x16xf32>
      %221 = arith.addf %55, %220 : vector<2x16xf32>
      %222 = tpu.iota {dimensions = array<i32: 1>} : vector<2x16xi32>
      %cst_83 = arith.constant dense<0xFF800000> : vector<2xf32>
      %223 = vector.multi_reduction <maximumf>, %221, %cst_83 [1] : vector<2x16xf32> to vector<2xf32>
      %224 = vector.shape_cast %223 : vector<2xf32> to vector<2x1xf32>
      %225 = vector.broadcast %224 : vector<2x1xf32> to vector<2x16xf32>
      %226 = arith.cmpf oge, %221, %225 : vector<2x16xf32>
      %c-1_i32 = arith.constant -1 : i32
      %227 = vector.broadcast %c-1_i32 : i32 to vector<2x16xi32>
      %228 = arith.select %226, %222, %227 : vector<2x16xi1>, vector<2x16xi32>
      %cst_84 = arith.constant dense<-2147483648> : vector<2xi32>
      %229 = vector.multi_reduction <maxsi>, %228, %cst_84 [1] : vector<2x16xi32> to vector<2xi32>
      %230 = vector.shape_cast %229 : vector<2xi32> to vector<2x1xi32>
      %231 = vector.broadcast %230 : vector<2x1xi32> to vector<2x16xi32>
      %232 = arith.cmpi eq, %222, %231 : vector<2x16xi32>
      %233 = arith.extui %232 : vector<2x16xi1> to vector<2x16xi32>
      %234 = arith.sitofp %233 : vector<2x16xi32> to vector<2x16xf32>
      %235 = arith.truncf %234 : vector<2x16xf32> to vector<2x16xbf16>
      %cst_85 = arith.constant dense<0.000000e+00> : vector<2x16xf32>
      %236 = tpu.matmul %235, %13, %cst_85 {dimension_numbers = #tpu.dot_dimension_numbers<[1], [0], [0], [1], [0, 0, 1, 1], [], []>} : vector<2x16xbf16>, vector<16x16xbf16>, vector<2x16xf32> -> vector<2x16xf32>
      %237 = arith.truncf %236 : vector<2x16xf32> to vector<2x16xbf16>
      %c0_86 = arith.constant 0 : index
      %c0_87 = arith.constant 0 : index
      %238 = vector.load %arg17[%c0_86, %c0_87] : memref<2x16xbf16, #tpu.memory_space<vmem>>, vector<2x16xbf16>
      tpu.vector_store %arg17[%c0_86, %c0_87], %237 {strides = array<i32>} : memref<2x16xbf16, #tpu.memory_space<vmem>>, vector<2x16xbf16>,
    } else {
    }
    %c1_i32_30 = arith.constant 1 : i32
    %66 = arith.addi %0, %c1_i32_30 : i32
    %67 = arith.index_cast %66 : i32 to index
    %68 = memref.load %arg2[%67] : memref<9xi32, #tpu.memory_space<smem>>
    %c0_i32_31 = arith.constant 0 : i32
    %69 = arith.cmpi ne, %68, %c0_i32_31 : i32
    %70 = arith.extui %69 : i1 to i32
    %c0_i32_32 = arith.constant 0 : i32
    %71 = arith.cmpi ne, %70, %c0_i32_32 : i32
    scf.if %71 {
      %218 = arith.index_cast %c1_i32_30 : i32 to index
      %c0_81 = arith.constant 0 : index
      %c0_82 = arith.constant 0 : index
      %219 = vector.load %arg6[%218, %c0_81, %c0_82] : memref<4x2x16xbf16, #tpu.memory_space<vmem>>, vector<1x2x16xbf16>
      %220 = vector.shape_cast %219 : vector<1x2x16xbf16> to vector<2x16xbf16>
      %c0_83 = arith.constant 0 : index
      %c0_84 = arith.constant 0 : index
      %221 = vector.load %arg17[%c0_83, %c0_84] : memref<2x16xbf16, #tpu.memory_space<vmem>>, vector<2x16xbf16>
      tpu.vector_store %arg17[%c0_83, %c0_84], %220 {strides = array<i32>} : memref<2x16xbf16, #tpu.memory_space<vmem>>, vector<2x16xbf16>,
    } else {
    }
    %c0_33 = arith.constant 0 : index
    %c0_34 = arith.constant 0 : index
    %72 = vector.load %arg17[%c0_33, %c0_34] : memref<2x16xbf16, #tpu.memory_space<vmem>>, vector<2x16xbf16>
    %cst_35 = arith.constant dense<0.000000e+00> : vector<2x128xf32>
    %73 = tpu.matmul %72, %4, %cst_35 {dimension_numbers = #tpu.dot_dimension_numbers<[1], [0], [0], [1], [0, 0, 1, 1], [], []>} : vector<2x16xbf16>, vector<16x128xbf16>, vector<2x128xf32> -> vector<2x128xf32>
    %74 = arith.truncf %52 : vector<2x32xf32> to vector<2x32xbf16>
    %cst_36 = arith.constant dense<0.000000e+00> : vector<2x128xf32>
    %75 = tpu.matmul %74, %5, %cst_36 {dimension_numbers = #tpu.dot_dimension_numbers<[1], [0], [0], [1], [0, 0, 1, 1], [], []>} : vector<2x32xbf16>, vector<32x128xbf16>, vector<2x128xf32> -> vector<2x128xf32>
    %76 = arith.addf %73, %75 : vector<2x128xf32>
    %77 = arith.addf %76, %9 : vector<2x128xf32>
    %78 = vector.extract_strided_slice %77 {offsets = [0, 0], sizes = [2, 32], strides = [1, 1]} : vector<2x128xf32> to vector<2x32xf32>
    %79 = arith.negf %78 : vector<2x32xf32>
    %80 = math.exp %79 : vector<2x32xf32>
    %cst_37 = arith.constant 1.000000e+00 : f32
    %81 = vector.broadcast %cst_37 : f32 to vector<2x32xf32>
    %82 = arith.addf %81, %80 : vector<2x32xf32>
    %83 = arith.divf %81, %82 : vector<2x32xf32>
    %84 = vector.extract_strided_slice %77 {offsets = [0, 32], sizes = [2, 32], strides = [1, 1]} : vector<2x128xf32> to vector<2x32xf32>
    %85 = arith.negf %84 : vector<2x32xf32>
    %86 = math.exp %85 : vector<2x32xf32>
    %cst_38 = arith.constant 1.000000e+00 : f32
    %87 = vector.broadcast %cst_38 : f32 to vector<2x32xf32>
    %88 = arith.addf %87, %86 : vector<2x32xf32>
    %89 = arith.divf %87, %88 : vector<2x32xf32>
    %90 = vector.extract_strided_slice %77 {offsets = [0, 64], sizes = [2, 32], strides = [1, 1]} : vector<2x128xf32> to vector<2x32xf32>
    %91 = math.tanh %90 : vector<2x32xf32>
    %92 = vector.extract_strided_slice %77 {offsets = [0, 96], sizes = [2, 32], strides = [1, 1]} : vector<2x128xf32> to vector<2x32xf32>
    %93 = arith.negf %92 : vector<2x32xf32>
    %94 = math.exp %93 : vector<2x32xf32>
    %cst_39 = arith.constant 1.000000e+00 : f32
    %95 = vector.broadcast %cst_39 : f32 to vector<2x32xf32>
    %96 = arith.addf %95, %94 : vector<2x32xf32>
    %97 = arith.divf %95, %96 : vector<2x32xf32>
    %98 = arith.mulf %89, %50 : vector<2x32xf32>
    %99 = arith.mulf %83, %91 : vector<2x32xf32>
    %100 = arith.addf %98, %99 : vector<2x32xf32>
    %101 = math.tanh %100 : vector<2x32xf32>
    %102 = arith.mulf %97, %101 : vector<2x32xf32>
    %103 = arith.truncf %102 : vector<2x32xf32> to vector<2x32xbf16>
    %cst_40 = arith.constant dense<0.000000e+00> : vector<2x16xf32>
    %104 = tpu.matmul %103, %6, %cst_40 {dimension_numbers = #tpu.dot_dimension_numbers<[1], [0], [0], [1], [0, 0, 1, 1], [], []>} : vector<2x32xbf16>, vector<32x16xbf16>, vector<2x16xf32> -> vector<2x16xf32>
    %105 = arith.addf %104, %12 : vector<2x16xf32>
    %106 = arith.index_cast %c1_i32_30 : i32 to index
    %c0_41 = arith.constant 0 : index
    %c0_42 = arith.constant 0 : index
    %107 = vector.load %arg14[%106, %c0_41, %c0_42] : memref<4x2x16xf32, #tpu.memory_space<vmem>>, vector<1x2x16xf32>
    %108 = vector.shape_cast %107 : vector<1x2x16xf32> to vector<2x16xf32>
    %109 = vector.shape_cast %105 : vector<2x16xf32> to vector<1x2x16xf32>
    tpu.vector_store %arg14[%106, %c0_41, %c0_42], %109 {strides = array<i32>} : memref<4x2x16xf32, #tpu.memory_space<vmem>>, vector<1x2x16xf32>,
    %c1_i32_43 = arith.constant 1 : i32
    %110 = arith.addi %66, %c1_i32_43 : i32
    %111 = arith.index_cast %110 : i32 to index
    %112 = memref.load %arg2[%111] : memref<9xi32, #tpu.memory_space<smem>>
    %c0_i32_44 = arith.constant 0 : i32
    %113 = arith.cmpi eq, %112, %c0_i32_44 : i32
    %114 = arith.extui %113 : i1 to i32
    %c0_i32_45 = arith.constant 0 : i32
    %115 = arith.cmpi ne, %114, %c0_i32_45 : i32
    scf.if %115 {
      %218 = arith.index_cast %c1_i32_30 : i32 to index
      %c0_81 = arith.constant 0 : index
      %c0_82 = arith.constant 0 : index
      %219 = vector.load %arg13[%218, %c0_81, %c0_82] : memref<4x2x16xf32, #tpu.memory_space<vmem>>, vector<1x2x16xf32>
      %220 = vector.shape_cast %219 : vector<1x2x16xf32> to vector<2x16xf32>
      %221 = arith.addf %105, %220 : vector<2x16xf32>
      %222 = tpu.iota {dimensions = array<i32: 1>} : vector<2x16xi32>
      %cst_83 = arith.constant dense<0xFF800000> : vector<2xf32>
      %223 = vector.multi_reduction <maximumf>, %221, %cst_83 [1] : vector<2x16xf32> to vector<2xf32>
      %224 = vector.shape_cast %223 : vector<2xf32> to vector<2x1xf32>
      %225 = vector.broadcast %224 : vector<2x1xf32> to vector<2x16xf32>
      %226 = arith.cmpf oge, %221, %225 : vector<2x16xf32>
      %c-1_i32 = arith.constant -1 : i32
      %227 = vector.broadcast %c-1_i32 : i32 to vector<2x16xi32>
      %228 = arith.select %226, %222, %227 : vector<2x16xi1>, vector<2x16xi32>
      %cst_84 = arith.constant dense<-2147483648> : vector<2xi32>
      %229 = vector.multi_reduction <maxsi>, %228, %cst_84 [1] : vector<2x16xi32> to vector<2xi32>
      %230 = vector.shape_cast %229 : vector<2xi32> to vector<2x1xi32>
      %231 = vector.broadcast %230 : vector<2x1xi32> to vector<2x16xi32>
      %232 = arith.cmpi eq, %222, %231 : vector<2x16xi32>
      %233 = arith.extui %232 : vector<2x16xi1> to vector<2x16xi32>
      %234 = arith.sitofp %233 : vector<2x16xi32> to vector<2x16xf32>
      %235 = arith.truncf %234 : vector<2x16xf32> to vector<2x16xbf16>
      %cst_85 = arith.constant dense<0.000000e+00> : vector<2x16xf32>
      %236 = tpu.matmul %235, %13, %cst_85 {dimension_numbers = #tpu.dot_dimension_numbers<[1], [0], [0], [1], [0, 0, 1, 1], [], []>} : vector<2x16xbf16>, vector<16x16xbf16>, vector<2x16xf32> -> vector<2x16xf32>
      %237 = arith.truncf %236 : vector<2x16xf32> to vector<2x16xbf16>
      %c0_86 = arith.constant 0 : index
      %c0_87 = arith.constant 0 : index
      %238 = vector.load %arg17[%c0_86, %c0_87] : memref<2x16xbf16, #tpu.memory_space<vmem>>, vector<2x16xbf16>
      tpu.vector_store %arg17[%c0_86, %c0_87], %237 {strides = array<i32>} : memref<2x16xbf16, #tpu.memory_space<vmem>>, vector<2x16xbf16>,
    } else {
    }
    %c2_i32 = arith.constant 2 : i32
    %116 = arith.addi %0, %c2_i32 : i32
    %117 = arith.index_cast %116 : i32 to index
    %118 = memref.load %arg2[%117] : memref<9xi32, #tpu.memory_space<smem>>
    %c0_i32_46 = arith.constant 0 : i32
    %119 = arith.cmpi ne, %118, %c0_i32_46 : i32
    %120 = arith.extui %119 : i1 to i32
    %c0_i32_47 = arith.constant 0 : i32
    %121 = arith.cmpi ne, %120, %c0_i32_47 : i32
    scf.if %121 {
      %218 = arith.index_cast %c2_i32 : i32 to index
      %c0_81 = arith.constant 0 : index
      %c0_82 = arith.constant 0 : index
      %219 = vector.load %arg6[%218, %c0_81, %c0_82] : memref<4x2x16xbf16, #tpu.memory_space<vmem>>, vector<1x2x16xbf16>
      %220 = vector.shape_cast %219 : vector<1x2x16xbf16> to vector<2x16xbf16>
      %c0_83 = arith.constant 0 : index
      %c0_84 = arith.constant 0 : index
      %221 = vector.load %arg17[%c0_83, %c0_84] : memref<2x16xbf16, #tpu.memory_space<vmem>>, vector<2x16xbf16>
      tpu.vector_store %arg17[%c0_83, %c0_84], %220 {strides = array<i32>} : memref<2x16xbf16, #tpu.memory_space<vmem>>, vector<2x16xbf16>,
    } else {
    }
    %c0_48 = arith.constant 0 : index
    %c0_49 = arith.constant 0 : index
    %122 = vector.load %arg17[%c0_48, %c0_49] : memref<2x16xbf16, #tpu.memory_space<vmem>>, vector<2x16xbf16>
    %cst_50 = arith.constant dense<0.000000e+00> : vector<2x128xf32>
    %123 = tpu.matmul %122, %4, %cst_50 {dimension_numbers = #tpu.dot_dimension_numbers<[1], [0], [0], [1], [0, 0, 1, 1], [], []>} : vector<2x16xbf16>, vector<16x128xbf16>, vector<2x128xf32> -> vector<2x128xf32>
    %124 = arith.truncf %102 : vector<2x32xf32> to vector<2x32xbf16>
    %cst_51 = arith.constant dense<0.000000e+00> : vector<2x128xf32>
    %125 = tpu.matmul %124, %5, %cst_51 {dimension_numbers = #tpu.dot_dimension_numbers<[1], [0], [0], [1], [0, 0, 1, 1], [], []>} : vector<2x32xbf16>, vector<32x128xbf16>, vector<2x128xf32> -> vector<2x128xf32>
    %126 = arith.addf %123, %125 : vector<2x128xf32>
    %127 = arith.addf %126, %9 : vector<2x128xf32>
    %128 = vector.extract_strided_slice %127 {offsets = [0, 0], sizes = [2, 32], strides = [1, 1]} : vector<2x128xf32> to vector<2x32xf32>
    %129 = arith.negf %128 : vector<2x32xf32>
    %130 = math.exp %129 : vector<2x32xf32>
    %cst_52 = arith.constant 1.000000e+00 : f32
    %131 = vector.broadcast %cst_52 : f32 to vector<2x32xf32>
    %132 = arith.addf %131, %130 : vector<2x32xf32>
    %133 = arith.divf %131, %132 : vector<2x32xf32>
    %134 = vector.extract_strided_slice %127 {offsets = [0, 32], sizes = [2, 32], strides = [1, 1]} : vector<2x128xf32> to vector<2x32xf32>
    %135 = arith.negf %134 : vector<2x32xf32>
    %136 = math.exp %135 : vector<2x32xf32>
    %cst_53 = arith.constant 1.000000e+00 : f32
    %137 = vector.broadcast %cst_53 : f32 to vector<2x32xf32>
    %138 = arith.addf %137, %136 : vector<2x32xf32>
    %139 = arith.divf %137, %138 : vector<2x32xf32>
    %140 = vector.extract_strided_slice %127 {offsets = [0, 64], sizes = [2, 32], strides = [1, 1]} : vector<2x128xf32> to vector<2x32xf32>
    %141 = math.tanh %140 : vector<2x32xf32>
    %142 = vector.extract_strided_slice %127 {offsets = [0, 96], sizes = [2, 32], strides = [1, 1]} : vector<2x128xf32> to vector<2x32xf32>
    %143 = arith.negf %142 : vector<2x32xf32>
    %144 = math.exp %143 : vector<2x32xf32>
    %cst_54 = arith.constant 1.000000e+00 : f32
    %145 = vector.broadcast %cst_54 : f32 to vector<2x32xf32>
    %146 = arith.addf %145, %144 : vector<2x32xf32>
    %147 = arith.divf %145, %146 : vector<2x32xf32>
    %148 = arith.mulf %139, %100 : vector<2x32xf32>
    %149 = arith.mulf %133, %141 : vector<2x32xf32>
    %150 = arith.addf %148, %149 : vector<2x32xf32>
    %151 = math.tanh %150 : vector<2x32xf32>
    %152 = arith.mulf %147, %151 : vector<2x32xf32>
    %153 = arith.truncf %152 : vector<2x32xf32> to vector<2x32xbf16>
    %cst_55 = arith.constant dense<0.000000e+00> : vector<2x16xf32>
    %154 = tpu.matmul %153, %6, %cst_55 {dimension_numbers = #tpu.dot_dimension_numbers<[1], [0], [0], [1], [0, 0, 1, 1], [], []>} : vector<2x32xbf16>, vector<32x16xbf16>, vector<2x16xf32> -> vector<2x16xf32>
    %155 = arith.addf %154, %12 : vector<2x16xf32>
    %156 = arith.index_cast %c2_i32 : i32 to index
    %c0_56 = arith.constant 0 : index
    %c0_57 = arith.constant 0 : index
    %157 = vector.load %arg14[%156, %c0_56, %c0_57] : memref<4x2x16xf32, #tpu.memory_space<vmem>>, vector<1x2x16xf32>
    %158 = vector.shape_cast %157 : vector<1x2x16xf32> to vector<2x16xf32>
    %159 = vector.shape_cast %155 : vector<2x16xf32> to vector<1x2x16xf32>
    tpu.vector_store %arg14[%156, %c0_56, %c0_57], %159 {strides = array<i32>} : memref<4x2x16xf32, #tpu.memory_space<vmem>>, vector<1x2x16xf32>,
    %c1_i32_58 = arith.constant 1 : i32
    %160 = arith.addi %116, %c1_i32_58 : i32
    %161 = arith.index_cast %160 : i32 to index
    %162 = memref.load %arg2[%161] : memref<9xi32, #tpu.memory_space<smem>>
    %c0_i32_59 = arith.constant 0 : i32
    %163 = arith.cmpi eq, %162, %c0_i32_59 : i32
    %164 = arith.extui %163 : i1 to i32
    %c0_i32_60 = arith.constant 0 : i32
    %165 = arith.cmpi ne, %164, %c0_i32_60 : i32
    scf.if %165 {
      %218 = arith.index_cast %c2_i32 : i32 to index
      %c0_81 = arith.constant 0 : index
      %c0_82 = arith.constant 0 : index
      %219 = vector.load %arg13[%218, %c0_81, %c0_82] : memref<4x2x16xf32, #tpu.memory_space<vmem>>, vector<1x2x16xf32>
      %220 = vector.shape_cast %219 : vector<1x2x16xf32> to vector<2x16xf32>
      %221 = arith.addf %155, %220 : vector<2x16xf32>
      %222 = tpu.iota {dimensions = array<i32: 1>} : vector<2x16xi32>
      %cst_83 = arith.constant dense<0xFF800000> : vector<2xf32>
      %223 = vector.multi_reduction <maximumf>, %221, %cst_83 [1] : vector<2x16xf32> to vector<2xf32>
      %224 = vector.shape_cast %223 : vector<2xf32> to vector<2x1xf32>
      %225 = vector.broadcast %224 : vector<2x1xf32> to vector<2x16xf32>
      %226 = arith.cmpf oge, %221, %225 : vector<2x16xf32>
      %c-1_i32 = arith.constant -1 : i32
      %227 = vector.broadcast %c-1_i32 : i32 to vector<2x16xi32>
      %228 = arith.select %226, %222, %227 : vector<2x16xi1>, vector<2x16xi32>
      %cst_84 = arith.constant dense<-2147483648> : vector<2xi32>
      %229 = vector.multi_reduction <maxsi>, %228, %cst_84 [1] : vector<2x16xi32> to vector<2xi32>
      %230 = vector.shape_cast %229 : vector<2xi32> to vector<2x1xi32>
      %231 = vector.broadcast %230 : vector<2x1xi32> to vector<2x16xi32>
      %232 = arith.cmpi eq, %222, %231 : vector<2x16xi32>
      %233 = arith.extui %232 : vector<2x16xi1> to vector<2x16xi32>
      %234 = arith.sitofp %233 : vector<2x16xi32> to vector<2x16xf32>
      %235 = arith.truncf %234 : vector<2x16xf32> to vector<2x16xbf16>
      %cst_85 = arith.constant dense<0.000000e+00> : vector<2x16xf32>
      %236 = tpu.matmul %235, %13, %cst_85 {dimension_numbers = #tpu.dot_dimension_numbers<[1], [0], [0], [1], [0, 0, 1, 1], [], []>} : vector<2x16xbf16>, vector<16x16xbf16>, vector<2x16xf32> -> vector<2x16xf32>
      %237 = arith.truncf %236 : vector<2x16xf32> to vector<2x16xbf16>
      %c0_86 = arith.constant 0 : index
      %c0_87 = arith.constant 0 : index
      %238 = vector.load %arg17[%c0_86, %c0_87] : memref<2x16xbf16, #tpu.memory_space<vmem>>, vector<2x16xbf16>
      tpu.vector_store %arg17[%c0_86, %c0_87], %237 {strides = array<i32>} : memref<2x16xbf16, #tpu.memory_space<vmem>>, vector<2x16xbf16>,
    } else {
    }
    %c3_i32 = arith.constant 3 : i32
    %166 = arith.addi %0, %c3_i32 : i32
    %167 = arith.index_cast %166 : i32 to index
    %168 = memref.load %arg2[%167] : memref<9xi32, #tpu.memory_space<smem>>
    %c0_i32_61 = arith.constant 0 : i32
    %169 = arith.cmpi ne, %168, %c0_i32_61 : i32
    %170 = arith.extui %169 : i1 to i32
    %c0_i32_62 = arith.constant 0 : i32
    %171 = arith.cmpi ne, %170, %c0_i32_62 : i32
    scf.if %171 {
      %218 = arith.index_cast %c3_i32 : i32 to index
      %c0_81 = arith.constant 0 : index
      %c0_82 = arith.constant 0 : index
      %219 = vector.load %arg6[%218, %c0_81, %c0_82] : memref<4x2x16xbf16, #tpu.memory_space<vmem>>, vector<1x2x16xbf16>
      %220 = vector.shape_cast %219 : vector<1x2x16xbf16> to vector<2x16xbf16>
      %c0_83 = arith.constant 0 : index
      %c0_84 = arith.constant 0 : index
      %221 = vector.load %arg17[%c0_83, %c0_84] : memref<2x16xbf16, #tpu.memory_space<vmem>>, vector<2x16xbf16>
      tpu.vector_store %arg17[%c0_83, %c0_84], %220 {strides = array<i32>} : memref<2x16xbf16, #tpu.memory_space<vmem>>, vector<2x16xbf16>,
    } else {
    }
    %c0_63 = arith.constant 0 : index
    %c0_64 = arith.constant 0 : index
    %172 = vector.load %arg17[%c0_63, %c0_64] : memref<2x16xbf16, #tpu.memory_space<vmem>>, vector<2x16xbf16>
    %cst_65 = arith.constant dense<0.000000e+00> : vector<2x128xf32>
    %173 = tpu.matmul %172, %4, %cst_65 {dimension_numbers = #tpu.dot_dimension_numbers<[1], [0], [0], [1], [0, 0, 1, 1], [], []>} : vector<2x16xbf16>, vector<16x128xbf16>, vector<2x128xf32> -> vector<2x128xf32>
    %174 = arith.truncf %152 : vector<2x32xf32> to vector<2x32xbf16>
    %cst_66 = arith.constant dense<0.000000e+00> : vector<2x128xf32>
    %175 = tpu.matmul %174, %5, %cst_66 {dimension_numbers = #tpu.dot_dimension_numbers<[1], [0], [0], [1], [0, 0, 1, 1], [], []>} : vector<2x32xbf16>, vector<32x128xbf16>, vector<2x128xf32> -> vector<2x128xf32>
    %176 = arith.addf %173, %175 : vector<2x128xf32>
    %177 = arith.addf %176, %9 : vector<2x128xf32>
    %178 = vector.extract_strided_slice %177 {offsets = [0, 0], sizes = [2, 32], strides = [1, 1]} : vector<2x128xf32> to vector<2x32xf32>
    %179 = arith.negf %178 : vector<2x32xf32>
    %180 = math.exp %179 : vector<2x32xf32>
    %cst_67 = arith.constant 1.000000e+00 : f32
    %181 = vector.broadcast %cst_67 : f32 to vector<2x32xf32>
    %182 = arith.addf %181, %180 : vector<2x32xf32>
    %183 = arith.divf %181, %182 : vector<2x32xf32>
    %184 = vector.extract_strided_slice %177 {offsets = [0, 32], sizes = [2, 32], strides = [1, 1]} : vector<2x128xf32> to vector<2x32xf32>
    %185 = arith.negf %184 : vector<2x32xf32>
    %186 = math.exp %185 : vector<2x32xf32>
    %cst_68 = arith.constant 1.000000e+00 : f32
    %187 = vector.broadcast %cst_68 : f32 to vector<2x32xf32>
    %188 = arith.addf %187, %186 : vector<2x32xf32>
    %189 = arith.divf %187, %188 : vector<2x32xf32>
    %190 = vector.extract_strided_slice %177 {offsets = [0, 64], sizes = [2, 32], strides = [1, 1]} : vector<2x128xf32> to vector<2x32xf32>
    %191 = math.tanh %190 : vector<2x32xf32>
    %192 = vector.extract_strided_slice %177 {offsets = [0, 96], sizes = [2, 32], strides = [1, 1]} : vector<2x128xf32> to vector<2x32xf32>
    %193 = arith.negf %192 : vector<2x32xf32>
    %194 = math.exp %193 : vector<2x32xf32>
    %cst_69 = arith.constant 1.000000e+00 : f32
    %195 = vector.broadcast %cst_69 : f32 to vector<2x32xf32>
    %196 = arith.addf %195, %194 : vector<2x32xf32>
    %197 = arith.divf %195, %196 : vector<2x32xf32>
    %198 = arith.mulf %189, %150 : vector<2x32xf32>
    %199 = arith.mulf %183, %191 : vector<2x32xf32>
    %200 = arith.addf %198, %199 : vector<2x32xf32>
    %201 = math.tanh %200 : vector<2x32xf32>
    %202 = arith.mulf %197, %201 : vector<2x32xf32>
    %203 = arith.truncf %202 : vector<2x32xf32> to vector<2x32xbf16>
    %cst_70 = arith.constant dense<0.000000e+00> : vector<2x16xf32>
    %204 = tpu.matmul %203, %6, %cst_70 {dimension_numbers = #tpu.dot_dimension_numbers<[1], [0], [0], [1], [0, 0, 1, 1], [], []>} : vector<2x32xbf16>, vector<32x16xbf16>, vector<2x16xf32> -> vector<2x16xf32>
    %205 = arith.addf %204, %12 : vector<2x16xf32>
    %206 = arith.index_cast %c3_i32 : i32 to index
    %c0_71 = arith.constant 0 : index
    %c0_72 = arith.constant 0 : index
    %207 = vector.load %arg14[%206, %c0_71, %c0_72] : memref<4x2x16xf32, #tpu.memory_space<vmem>>, vector<1x2x16xf32>
    %208 = vector.shape_cast %207 : vector<1x2x16xf32> to vector<2x16xf32>
    %209 = vector.shape_cast %205 : vector<2x16xf32> to vector<1x2x16xf32>
    tpu.vector_store %arg14[%206, %c0_71, %c0_72], %209 {strides = array<i32>} : memref<4x2x16xf32, #tpu.memory_space<vmem>>, vector<1x2x16xf32>,
    %c1_i32_73 = arith.constant 1 : i32
    %210 = arith.addi %166, %c1_i32_73 : i32
    %211 = arith.index_cast %210 : i32 to index
    %212 = memref.load %arg2[%211] : memref<9xi32, #tpu.memory_space<smem>>
    %c0_i32_74 = arith.constant 0 : i32
    %213 = arith.cmpi eq, %212, %c0_i32_74 : i32
    %214 = arith.extui %213 : i1 to i32
    %c0_i32_75 = arith.constant 0 : i32
    %215 = arith.cmpi ne, %214, %c0_i32_75 : i32
    scf.if %215 {
      %218 = arith.index_cast %c3_i32 : i32 to index
      %c0_81 = arith.constant 0 : index
      %c0_82 = arith.constant 0 : index
      %219 = vector.load %arg13[%218, %c0_81, %c0_82] : memref<4x2x16xf32, #tpu.memory_space<vmem>>, vector<1x2x16xf32>
      %220 = vector.shape_cast %219 : vector<1x2x16xf32> to vector<2x16xf32>
      %221 = arith.addf %205, %220 : vector<2x16xf32>
      %222 = tpu.iota {dimensions = array<i32: 1>} : vector<2x16xi32>
      %cst_83 = arith.constant dense<0xFF800000> : vector<2xf32>
      %223 = vector.multi_reduction <maximumf>, %221, %cst_83 [1] : vector<2x16xf32> to vector<2xf32>
      %224 = vector.shape_cast %223 : vector<2xf32> to vector<2x1xf32>
      %225 = vector.broadcast %224 : vector<2x1xf32> to vector<2x16xf32>
      %226 = arith.cmpf oge, %221, %225 : vector<2x16xf32>
      %c-1_i32 = arith.constant -1 : i32
      %227 = vector.broadcast %c-1_i32 : i32 to vector<2x16xi32>
      %228 = arith.select %226, %222, %227 : vector<2x16xi1>, vector<2x16xi32>
      %cst_84 = arith.constant dense<-2147483648> : vector<2xi32>
      %229 = vector.multi_reduction <maxsi>, %228, %cst_84 [1] : vector<2x16xi32> to vector<2xi32>
      %230 = vector.shape_cast %229 : vector<2xi32> to vector<2x1xi32>
      %231 = vector.broadcast %230 : vector<2x1xi32> to vector<2x16xi32>
      %232 = arith.cmpi eq, %222, %231 : vector<2x16xi32>
      %233 = arith.extui %232 : vector<2x16xi1> to vector<2x16xi32>
      %234 = arith.sitofp %233 : vector<2x16xi32> to vector<2x16xf32>
      %235 = arith.truncf %234 : vector<2x16xf32> to vector<2x16xbf16>
      %cst_85 = arith.constant dense<0.000000e+00> : vector<2x16xf32>
      %236 = tpu.matmul %235, %13, %cst_85 {dimension_numbers = #tpu.dot_dimension_numbers<[1], [0], [0], [1], [0, 0, 1, 1], [], []>} : vector<2x16xbf16>, vector<16x16xbf16>, vector<2x16xf32> -> vector<2x16xf32>
      %237 = arith.truncf %236 : vector<2x16xf32> to vector<2x16xbf16>
      %c0_86 = arith.constant 0 : index
      %c0_87 = arith.constant 0 : index
      %238 = vector.load %arg17[%c0_86, %c0_87] : memref<2x16xbf16, #tpu.memory_space<vmem>>, vector<2x16xbf16>
      tpu.vector_store %arg17[%c0_86, %c0_87], %237 {strides = array<i32>} : memref<2x16xbf16, #tpu.memory_space<vmem>>, vector<2x16xbf16>,
    } else {
    }
    %c4_i32_76 = arith.constant 4 : i32
    %c0_77 = arith.constant 0 : index
    %c0_78 = arith.constant 0 : index
    %216 = vector.load %arg15[%c0_77, %c0_78] : memref<2x32xf32, #tpu.memory_space<vmem>>, vector<2x32xf32>
    tpu.vector_store %arg15[%c0_77, %c0_78], %202 {strides = array<i32>} : memref<2x32xf32, #tpu.memory_space<vmem>>, vector<2x32xf32>,
    %c0_79 = arith.constant 0 : index
    %c0_80 = arith.constant 0 : index
    %217 = vector.load %arg16[%c0_79, %c0_80] : memref<2x32xf32, #tpu.memory_space<vmem>>, vector<2x32xf32>
    tpu.vector_store %arg16[%c0_79, %c0_80], %200 {strides = array<i32>} : memref<2x32xf32, #tpu.memory_space<vmem>>, vector<2x32xf32>,
    return
  }
  func.func @transform_0(%arg0: i32, %arg1: i32, %arg2: memref<9xi32, #tpu.memory_space<smem>>) -> (i32, i32) {
    %c0_i32 = arith.constant 0 : i32
    %c0_i32_0 = arith.constant 0 : i32
    return %arg0, %c0_i32 : i32, i32
  }
  func.func @transform_1(%arg0: i32, %arg1: i32, %arg2: memref<9xi32, #tpu.memory_space<smem>>) -> (i32, i32) {
    %c0_i32 = arith.constant 0 : i32
    %c0_i32_0 = arith.constant 0 : i32
    %c0_i32_1 = arith.constant 0 : i32
    return %c0_i32, %c0_i32_0 : i32, i32
  }
  func.func @transform_2(%arg0: i32, %arg1: i32, %arg2: memref<9xi32, #tpu.memory_space<smem>>) -> (i32, i32) {
    %c0_i32 = arith.constant 0 : i32
    %c0_i32_0 = arith.constant 0 : i32
    %c0_i32_1 = arith.constant 0 : i32
    return %c0_i32, %c0_i32_0 : i32, i32
  }
  func.func @transform_3(%arg0: i32, %arg1: i32, %arg2: memref<9xi32, #tpu.memory_space<smem>>) -> (i32, i32, i32) {
    %c0_i32 = arith.constant 0 : i32
    %c0_i32_0 = arith.constant 0 : i32
    return %arg1, %arg0, %c0_i32 : i32, i32, i32
  }
  func.func @transform_4(%arg0: i32, %arg1: i32, %arg2: memref<9xi32, #tpu.memory_space<smem>>) -> (i32, i32) {
    %c0_i32 = arith.constant 0 : i32
    %c0_i32_0 = arith.constant 0 : i32
    %c0_i32_1 = arith.constant 0 : i32
    return %c0_i32, %c0_i32_0 : i32, i32
  }
  func.func @transform_5(%arg0: i32, %arg1: i32, %arg2: memref<9xi32, #tpu.memory_space<smem>>) -> (i32, i32) {
    %c0_i32 = arith.constant 0 : i32
    %c0_i32_0 = arith.constant 0 : i32
    %c0_i32_1 = arith.constant 0 : i32
    return %c0_i32, %c0_i32_0 : i32, i32
  }
  func.func @transform_6(%arg0: i32, %arg1: i32, %arg2: memref<9xi32, #tpu.memory_space<smem>>) -> (i32, i32) {
    %c0_i32 = arith.constant 0 : i32
    %c0_i32_0 = arith.constant 0 : i32
    %c0_i32_1 = arith.constant 0 : i32
    return %c0_i32, %c0_i32_0 : i32, i32
  }
  func.func @transform_7(%arg0: i32, %arg1: i32, %arg2: memref<9xi32, #tpu.memory_space<smem>>) -> (i32, i32) {
    %c0_i32 = arith.constant 0 : i32
    %c0_i32_0 = arith.constant 0 : i32
    %c0_i32_1 = arith.constant 0 : i32
    return %c0_i32, %c0_i32_0 : i32, i32
  }
  func.func @transform_8(%arg0: i32, %arg1: i32, %arg2: memref<9xi32, #tpu.memory_space<smem>>) -> (i32, i32) {
    %c0_i32 = arith.constant 0 : i32
    %c0_i32_0 = arith.constant 0 : i32
    %c0_i32_1 = arith.constant 0 : i32
    return %c0_i32, %c0_i32_0 : i32, i32
  }
  func.func @transform_9(%arg0: i32, %arg1: i32, %arg2: memref<9xi32, #tpu.memory_space<smem>>) -> (i32, i32) {
    %c0_i32 = arith.constant 0 : i32
    %c0_i32_0 = arith.constant 0 : i32
    %c0_i32_1 = arith.constant 0 : i32
    return %c0_i32, %c0_i32_0 : i32, i32
  }
  func.func @transform_10(%arg0: i32, %arg1: i32, %arg2: memref<9xi32, #tpu.memory_space<smem>>) -> (i32, i32, i32) {
    %c0_i32 = arith.constant 0 : i32
    %c0_i32_0 = arith.constant 0 : i32
    return %arg1, %arg0, %c0_i32 : i32, i32, i32
  }
  func.func @transform_11(%arg0: i32, %arg1: i32, %arg2: memref<9xi32, #tpu.memory_space<smem>>) -> (i32, i32, i32) {
    %c0_i32 = arith.constant 0 : i32
    %c0_i32_0 = arith.constant 0 : i32
    return %arg1, %arg0, %c0_i32 : i32, i32, i32
  }
}

</mosaic_0001>

<bundles_post_ra>
// kernel: tpu_custom_call.1
= control target key start
LH: loop header
LB: loop body
LE: loop exit
PB: predicated region body
PF: predicated region fallthrough
CT: control target
= control target key end

     0   :  { %s3170_s0 = inlined_call_operand.vmem [shape: s32[9], index: 0, kind: input, shape index: {}]   ;;  %s3171_s1 = inlined_call_operand.vmem [shape: bf16[2,8], index: 1, kind: input, shape index: {}]   ;;  %s3172_s2 = inlined_call_operand.hbm [shape: bf16[8,32], index: 2, kind: input, shape index: {}]   ;;  %s3173_s3 = inlined_call_operand.hbm [shape: f32[1,32], index: 3, kind: input, shape index: {}]   ;;  %s3174_s4 = inlined_call_operand.hbm [shape: bf16[8,2,16], index: 4, kind: input, shape index: {}]   ;;  %s3175_s5 = inlined_call_operand.hbm [shape: bf16[16,128], index: 5, kind: input, shape index: {}]   ;;  %s3176_s6 = inlined_call_operand.vmem [shape: bf16[32,128], index: 6, kind: input, shape index: {}]   ;;  %s3177_s7 = inlined_call_operand.hbm [shape: f32[1,128], index: 7, kind: input, shape index: {}]   ;;  %s3178_s8 = inlined_call_operand.vmem [shape: bf16[32,16], index: 8, kind: input, shape index: {}]   ;;  %s3179_s9 = inlined_call_operand.vmem [shape: f32[1,16], index: 9, kind: input, shape index: {}]   ;;  %s3180_s10 = inlined_call_operand.vmem [shape: bf16[16,16], index: 10, kind: input, shape index: {}]   ;;  %s3181_s11 = inlined_call_operand.vmem [shape: f32[8,2,16], index: 11, kind: input, shape index: {}]   ;;  %s3182_s12 = inlined_call_operand.hbm [shape: f32[8,2,16], index: 12, kind: output, shape index: {}]  }
   0x1   :  { %3190 = sst [smem:[#allocation26_spill]] %s3172_s2  ;;  %s17_s23 = sshll.u32 %s3170_s0, 4  ;;  %s18_s23 = int_to_ptr.vmem [resolvable:$true] %s17_s23 }
   0x2   :  { %3191 = sst [smem:[#allocation27_spill]] %s3173_s3  ;;  %s2252_s24 = scalar_lea.vmem %s18_s23, 16 }
   0x3   :  { %3192 = sst [smem:[#allocation28_spill]] %s3179_s9  ;;  %p2253_p0 = scmp.ne.s32.totalorder %s18_s23, %s2252_s24 }
   0x4   :  { %3193 = sst [smem:[#allocation29_spill]] %s3180_s10  ;;  %p2257_p1 = scmp.lt.s32.totalorder %s18_s23, %s18_s23 }
   0x5   :  { %3194 = sst [smem:[#allocation30_spill]] %s3182_s12  ;;  %p2258_p2 = scmp.lt.s32.totalorder %s2252_s24, %s2252_s24 }
   0x7   :  { %p2259_p3 = por %p2258_p2, %p2257_p1 }
   0x9   :  { %p2260_p4 = pnand %p2259_p3, %p2253_p0 }
   0xb   :  { %2263 = shalt.err (!%p2260_p4)  }
   0xc   :  { %s2508_s25 = smov [#allocation6]  }
   0xd   :  { %20 = dma.vmem_to_smem %s18_s23, 16, %s2508_s25, [#allocation5] }
   0xe   :  { %2458 = dma.done.wait [#allocation5], 16 }
   0xf   :  { %2459 = vsyncadd [#allocation5], 4294967280 }
  0x10   :  { %22 = sfence }
  0x11   :  { %23 = vsyncpa [#allocation8], 0 }
  0x12   :  { %24 = vsyncpa [#allocation11], 0 }
  0x13   :  { %25 = vsyncpa [#allocation15], 0 }
  0x14   :  { %26 = vsyncpa [#allocation9], 0 }
  0x15   :  { %28 = vsyncpa [#allocation9 + $0x1], 0  ;;  %s2603_s26 = smov 0   ;;  %s2605_s0 = smov 0  }
  0x16   :  { %s2607_s27 = smov 0   ;;  %s2609_s28 = smov 0  }
  0x17   :  { %s2611_s29 = smov 0   ;;  %s2613_s30 = smov 0  }
  0x18 LB: > { %3195 = sst [smem:[#allocation24_spill]] %s2486_s26  ;;  %s2634_s13 = sadd.s32 4294967295, %s2506_s30   ;;  %s2506_s30 = sphi %s2613_s30, %s34_s30   ;;  %s2502_s29 = sphi %s2611_s29, %s3228_s29   ;;  %s2498_s28 = sphi %s2609_s28, %s3227_s28   ;;  %s2494_s27 = sphi %s2607_s27, %s3226_s27   ;;  %s2490_s0 = sphi %s2605_s0, %s3225_s0   ;;  %s2486_s26 = sphi %s2603_s26, %s3224_s26  }
  0x19   : > { %s1853_s14 = sadd.s32 4294967294, %s2506_s30   ;;  %p136_p5 = scmp.ne.s32.totalorder %s2490_s0, %s2486_s26 }
  0x1a   : > { %p3186_p6 = scmp.eq.s32.totalorder %s2634_s13, 0  ;;  %p322_p8 = scmp.eq.s32.totalorder %s1853_s14, 1 }
  0x1b   : > { %p1854_p10 = scmp.ge.s32.totalorder %s2506_s30, 1  ;;  %p329_p12 = scmp.lt.s32.totalorder %s2506_s30, 3 }
  0x1c   : > { %p2643_p9 = por %p3186_p6, %p136_p5  ;;  %p2648_p11 = por %p322_p8, %p136_p5 }
  0x1d   : > { %p2653_p13 = pnand %p1854_p10, %p329_p12  ;;  %s2509_s18 = smov [#allocation7]  }
  0x1e   : > { %s3196_s15 = scalar_select %p2643_p9, 1, 0 }
  0x1f   : > { %s3197_s16 = scalar_select %p2648_p11, 1, 0 }
  0x20   : > { %s3199_s17 = scalar_select %p2653_p13, 1, 0 }
  0x21   : > { %3198 = sst [smem:[#allocation25_spill]] %s3197_s16  ;;  %s348_s19 = sshll.u32 %s2509_s18, 4  ;;  %s349_s19 = int_to_ptr.vmem [resolvable:$true] %s348_s19 }
  0x22   : > { %p2116_p1 = pneg %p2653_p13  ;;  %s2510_s20 = smov [#allocation10]  }
  0x23   : > { %s359_s21 = sshll.u32 %s2510_s20, 4  ;;  %s2511_s23 = smov [#allocation13]   ;;  %s2666_s21 = int_to_ptr.vmem [resolvable:$true] %s359_s21 }
  0x24   : > { %p2662_p2 = pnand %p2116_p1, %p3186_p6  ;;  %s369_s24 = sshll.u32 %s2511_s23, 4  ;;  %s2668_s24 = int_to_ptr.vmem [resolvable:$true] %s369_s24 }
  0x25   : > { %s3201_s2 = sld [smem:[#allocation26_spill]] }
  0x26   : > { %p2678_p4 = pneg %p2662_p2 }
  0x2b   : > { %s2264_s18 = scalar_lea.hbm %s3201_s2, 64 }
  0x2c   : > { %p2265_p3 = scmp.ne.s32.totalorder %s3201_s2, %s2264_s18  ;;  %p2271_p10 = scmp.lt.u32.totalorder %s2264_s18, %s3201_s2 }
  0x2e   : > { %p2267_p5 = pnand %p2678_p4, %p2265_p3 }
  0x30   : > { %p2268_p8 = pneg %p2267_p5 }
  0x32   : > { %p2273_p12 = pnand %p2271_p10, %p2268_p8 }
  0x34   : > { %2276 = shalt.err (!%p2273_p12)
}
  0x35   : > { %s2277_s25 = scalar_lea.vmem %s349_s19, 64  ;;  %p2285_p7 = scmp.lt.s32.totalorder %s349_s19, %s349_s19 }
  0x36   : > { %p2278_p1 = scmp.ne.s32.totalorder %s349_s19, %s2277_s25  ;;  %p2286_p11 = scmp.lt.s32.totalorder %s2277_s25, %s2277_s25 }
  0x38   : > { %p2280_p0 = pnand %p2278_p1, %p2678_p4  ;;  %p2287_p9 = por %p2286_p11, %p2285_p7 }
  0x3a   : > { %p2281_p6 = pneg %p2280_p0 }
  0x3c   : > { %p2288_p13 = pnand %p2287_p9, %p2281_p6 }
  0x3e   : > { %2291 = shalt.err (!%p2288_p13)
}
  0x3f   : > { %2119 = dma.hbm_to_vmem [thread:$0]  (!%p2662_p2), %s3201_s2, 64, %s349_s19, [#allocation8]  }
  0x40   : > { %s3203_s3 = sld [smem:[#allocation27_spill]] }
  0x46   : > { %s2292_s18 = scalar_lea.hbm %s3203_s3, 16 }
  0x47   : > { %p2293_p0 = scmp.ne.s32.totalorder %s3203_s3, %s2292_s18  ;;  %p2299_p6 = scmp.lt.u32.totalorder %s2292_s18, %s3203_s3 }
  0x49   : > { %p2295_p3 = pnand %p2293_p0, %p2678_p4 }
  0x4b   : > { %p2296_p7 = pneg %p2295_p3 }
  0x4d   : > { %p2301_p9 = pnand %p2299_p6, %p2296_p7 }
  0x4f   : > { %2304 = shalt.err (!%p2301_p9)
}
  0x50   : > { %s2305_s19 = scalar_lea.vmem %s2666_s21, 16  ;;  %s2312_s10 = scalar_lea.vmem %s2666_s21, 32 }
  0x51   : > { %p2306_p11 = scmp.ne.s32.totalorder %s2666_s21, %s2305_s19  ;;  %p2313_p8 = scmp.lt.s32.totalorder %s2666_s21, %s2666_s21 }
  0x52   : > { %p2314_p10 = scmp.lt.s32.totalorder %s2312_s10, %s2305_s19 }
  0x53   : > { %p2308_p13 = pnand %p2306_p11, %p2678_p4 }
  0x54   : > { %p2315_p12 = por %p2314_p10, %p2313_p8 }
  0x55   : > { %p2309_p5 = pneg %p2308_p13 }
  0x57   : > { %p2316_p1 = pnand %p2315_p12, %p2309_p5 }
  0x59   : > { %2319 = shalt.err (!%p2316_p1)
}
  0x5a   : > { %2122 = dma.hbm_to_vmem [thread:$0]  (!%p2662_p2), %s3203_s3, 16, %s2666_s21, [#allocation11]  }
  0x5b   : > { %s2320_s14 = scalar_lea.hbm %s3175_s5, 128 }
  0x5c   : > { %p2321_p0 = scmp.ne.s32.totalorder %s3175_s5, %s2320_s14  ;;  %p2327_p6 = scmp.lt.u32.totalorder %s2320_s14, %s3175_s5 }
  0x5e   : > { %p2323_p3 = pnand %p2321_p0, %p2678_p4 }
  0x60   : > { %p2324_p7 = pneg %p2323_p3 }
  0x62   : > { %p2329_p9 = pnand %p2327_p6, %p2324_p7 }
  0x64   : > { %2332 = shalt.err (!%p2329_p9)
}
  0x65   : > { %s2333_s21 = scalar_lea.vmem %s2668_s24, 128  ;;  %p2341_p8 = scmp.lt.s32.totalorder %s2668_s24, %s2668_s24 }
  0x66   : > { %p2334_p11 = scmp.ne.s32.totalorder %s2668_s24, %s2333_s21  ;;  %p2342_p10 = scmp.lt.s32.totalorder %s2333_s21, %s2333_s21 }
  0x68   : > { %p2336_p13 = pnand %p2334_p11, %p2678_p4  ;;  %p2343_p12 = por %p2342_p10, %p2341_p8 }
  0x6a   : > { %p2337_p5 = pneg %p2336_p13 }
  0x6c   : > { %p2344_p1 = pnand %p2343_p12, %p2337_p5 }
  0x6e   : > { %2347 = shalt.err (!%p2344_p1)
}
  0x6f   : > { %s2512_s10 = smov 64   ;;  %s2513_s9 = smov 4  }
  0x70   : > { %2125 = dma.hbm_to_vmem [thread:$0]  (!%p2662_p2), %s3175_s5, 128, %s2668_s24, [#allocation11], %s2512_s10, %s2512_s10, %s2513_s9  }
  0x71   : > { %s2514_s12 = smov [#allocation14]   ;;  %s2348_s25 = scalar_lea.hbm %s3177_s7, 16 }
  0x72   : > { %s386_s14 = sshll.u32 %s2514_s12, 4  ;;  %p2349_p0 = scmp.ne.s32.totalorder %s3177_s7, %s2348_s25  ;;  %s387_s14 = int_to_ptr.vmem [resolvable:$true] %s386_s14 }
  0x73   : > { %p2355_p6 = scmp.lt.u32.totalorder %s2348_s25, %s3177_s7 }
  0x74   : > { %p2351_p3 = pnand %p2349_p0, %p2678_p4 }
  0x76   : > { %p2352_p7 = pneg %p2351_p3 }
  0x78   : > { %p2357_p9 = pnand %p2355_p6, %p2352_p7 }
  0x7a   : > { %2360 = shalt.err (!%p2357_p9)
}
  0x7b   : > { %s2361_s24 = scalar_lea.vmem %s387_s14, 16  ;;  %s2368_s10 = scalar_lea.vmem %s387_s14, 32 }
  0x7c   : > { %p2362_p11 = scmp.ne.s32.totalorder %s387_s14, %s2361_s24  ;;  %p2369_p8 = scmp.lt.s32.totalorder %s387_s14, %s387_s14 }
  0x7d   : > { %p2370_p10 = scmp.lt.s32.totalorder %s2368_s10, %s2361_s24 }
  0x7e   : > { %p2364_p13 = pnand %p2362_p11, %p2678_p4 }
  0x7f   : > { %p2371_p12 = por %p2370_p10, %p2369_p8 }
  0x80   : > { %p2365_p5 = pneg %p2364_p13 }
  0x82   : > { %p2372_p1 = pnand %p2371_p12, %p2365_p5 }
  0x84   : > { %2375 = shalt.err (!%p2372_p1)
}
  0x85   : > { %2128 = dma.hbm_to_vmem [thread:$0]  (!%p2662_p2), %s3177_s7, 16, %s387_s14, [#allocation15]  }
  0x86   : > { %s43_s2 = sadd.s32 1, %s2502_s29  ;;  %s123_s3 = sadd.s32 1, %s2494_s27 }
  0x87   : > { %p44_p4 = scmp.ge.s32.totalorder %s43_s2, 2  ;;  %p130_p0 = scmp.ne.s32.totalorder %s2494_s27, %s2490_s0 }
  0x88   : > { %p131_p3 = scmp.eq.s32.totalorder %s2506_s30, 0  ;;  %p2141_p7 = scmp.lt.s32.totalorder %s2506_s30, 2 }
  0x89   : > { %s3230_s2 = smov (%p44_p4, %s43_s2), 0  ;;  %p3204_p9 = scmp.eq.s32.totalorder %s2634_s13, 1 }
  0x8a   : > { %p132_p6 = por %p131_p3, %p130_p0  ;;  %s118_s20 = ssub.s32 %s2502_s29, %s3230_s2 }
  0x8b   : > { %p2769_p11 = por %p3204_p9, %p130_p0  ;;  %s406_s16 = sand.u32 1, %s2506_s30  }
  0x8c   : > { %p121_p13 = scmp.eq.s32.totalorder %s118_s20, 0  ;;  %s408_s12 = sand.u32 1, %s2494_s27  }
  0x8d   : > { %s1934_s14 = sshll.u32 %s2502_s29, 6  ;;  %s1861_s23 = sshll.u32 %s408_s12, 2 }
  0x8e   : > { %s2779_s18 = scalar_select %p121_p13, %s2494_s27, %s123_s3  }
  0x8f   : > { %s2784_s21 = scalar_lea.hbm %s3174_s4, %s1934_s14  ;;  %p2786_p2 = pnand %p2141_p7, %p132_p6 }
  0x90   : > { %s410_s10 = scalar_lea.vmem [#allocation12], %s1861_s23  ;;  %s2792_s26 = scalar_lea.sflag [#allocation8], %s406_s16 }
  0x91   : > { %s418_s9 = sshll.u32 %s410_s10, 4  ;;  %s2376_s3 = scalar_lea.hbm %s2784_s21, 64  ;;  %s2790_s9 = int_to_ptr.vmem [resolvable:$true] %s418_s9 }
  0x92   : > { %p2377_p5 = scmp.ne.s32.totalorder %s2784_s21, %s2376_s3  ;;  %p2378_p8 = pneg %p2786_p2 }
  0x93   : > { %s2381_s14 = scalar_lea.hbm %s3174_s4, 128  ;;  %p2382_p1 = scmp.lt.u32.totalorder %s2784_s21, %s3174_s4 }
  0x94   : > { %p2379_p10 = pnand %p2378_p8, %p2377_p5  ;;  %p2383_p4 = scmp.lt.u32.totalorder %s2381_s14, %s2376_s3 }
  0x95   : > { %p2385_p3 = scmp.lt.u32.totalorder %s2376_s3, %s2784_s21 }
  0x96   : > { %p2380_p12 = pneg %p2379_p10  ;;  %p2384_p0 = por %p2383_p4, %p2382_p1 }
  0x98   : > { %p2386_p7 = por %p2385_p3, %p2384_p0 }
  0x9a   : > { %p2387_p6 = pnand %p2386_p7, %p2380_p12 }
  0x9c   : > { %2390 = shalt.err (!%p2387_p6)
}
  0x9d   : > { %s2391_s16 = scalar_lea.vmem %s2790_s9, 64  ;;  %s2515_s23 = smov [#allocation12]  }
  0x9e   : > { %p2392_p9 = scmp.ne.s32.totalorder %s2790_s9, %s2391_s16  ;;  %s2396_s10 = sshll.u32 %s2515_s23, 4  ;;  %s2397_s10 = int_to_ptr.vmem [resolvable:$false] %s2396_s10 }
  0x9f   : > { %s2398_s20 = scalar_lea.vmem %s2397_s10, 128  ;;  %p2399_p10 = scmp.lt.s32.totalorder %s2790_s9, %s2397_s10 }
  0xa0   : > { %p2394_p13 = pnand %p2392_p9, %p2378_p8  ;;  %p2400_p1 = scmp.lt.s32.totalorder %s2398_s20, %s2391_s16 }
  0xa2   : > { %p2395_p5 = pneg %p2394_p13  ;;  %p2401_p4 = por %p2400_p1, %p2399_p10 }
  0xa4   : > { %p2402_p0 = pnand %p2401_p4, %p2395_p5 }
  0xa6   : > { %2405 = shalt.err (!%p2402_p0)
}
  0xa7   : > { %s2516_s3 = smov 16   ;;  %s2517_s12 = smov 1  }
  0xa8   : > { %2132 = dma.hbm_to_vmem [thread:$0]  (!%p2786_p2), %s2784_s21, 64, %s2790_s9, %s2792_s26, %s2516_s3, %s2516_s3, %s2517_s12  }
  0xa9   : > { %p3207_p8 = scmp.ne.s32.totalorder %s3199_s17, 0 }
  0xaa   : > { %p3208_p12 = scmp.eq.s32.totalorder (!%p3207_p8), %s2634_s13, 0 }
  0xab   : > { %442 = sbr.rel (%p3207_p8) target bundleno = 6959 (0x1b2f), region = 64 }
  0xb2   : > { %2461 = dma.done.wait (%p3208_p12), [#allocation8], 64   ;;  %p3209_p3 = pmov %p3208_p12 }
  0xb4   : > { %2463 = vsyncadd (%p3209_p3), [#allocation8], 4294967232  ;;  %p3210_p7 = pmov %p3209_p3 }
  0xb5   : > { %p3211_p6 = pmov %p3209_p3 }
  0xb6   : > { %2465 = dma.done.wait (%p3210_p7), [#allocation11], 16  }
  0xb7   : > { %2467 = vsyncadd (%p3211_p6), [#allocation11], 4294967280  ;;  %s452_s24 = sand.u32 1, %s2634_s13   ;;  %s2832_s21 = sand.u32 1, %s2490_s0  }
  0xb8   : > { %s1867_s17 = sshll.u32 %s2832_s21, 2  ;;  %s453_s9 = scalar_lea.sflag [#allocation8], %s452_s24 }
  0xb9   : > { %s2835_s26 = scalar_lea.vmem [#allocation12], %s1867_s17  ;;  %p3212_p2 = scmp.ne.s32.totalorder %s3196_s15, 0 }
  0xbb   : > { %2469 = dma.done.wait (%p3212_p2), %s453_s9, 64  }
  0xbc   : > { %2471 = vsyncadd (%p3212_p2), %s453_s9, 4294967232  ;;  %p3213_p9 = pmov %p3209_p3 }
  0xbd   : > { %p3214_p13 = pmov %p3209_p3 }
  0xbe   : > { %2473 = dma.done.wait (%p3213_p9), [#allocation11], 128  }
  0xbf   : > { %2475 = vsyncadd (%p3214_p13), [#allocation11], 4294967168  ;;  %p3215_p5 = pmov %p3209_p3 }
  0xc0   : > { %p3216_p10 = pmov %p3209_p3 }
  0xc1   : > { %2477 = dma.done.wait (%p3215_p5), [#allocation15], 16  }
  0xc2   : > { %2479 = vsyncadd (%p3216_p10), [#allocation15], 4294967280  ;;  %s1870_s14 = sshll.u32 %s2832_s21, 3  ;;  %s2851_s25 = sshll.u32 %s2498_s28, 2 }
  0xc3   : > { %p519_p1 = scmp.lt.s32.totalorder %s2851_s25, 7  ;;  %s2860_s20 = scalar_lea.vmem [#allocation16], %s1870_s14 }
  0xc4   : > { %p1874_p4 = scmp.ne.s32.totalorder %s2498_s28, 0 }
  0xc5   : > { %s520_s15 = scalar_select %p519_p1, %s2851_s25, 7 }
  0xc6   : > { %533 = sbr.rel (%p1874_p4) target bundleno = 418 (0x1a2), region = 88  ;;  %v535_v0 = vld [vmem:[#allocation7] sm:$0xf] (!%p1874_p4)  ;;  %vm547_vm0 = vcmask (!%p1874_p4), 1043456   ;;  %v2518_v1 = vmov (!%p1874_p4), 0.0   ;;  %vm2519_vm1 = vmmov (!%p1874_p4), 0  }
  0xc7   : > { %s1872_s19 = sshll.u32 %s520_s15, 1  ;;  %1978 = vmatprep.subr.bf16.mxu0 (!%p1874_p4), %v2518_v1  ;;  %v549_v2 = vsel (!%p1874_p4), %vm547_vm0, %v535_v0, 0  ;;  %1980 = vmatprep.mubr.msk.bf16.mxu0 (!%p1874_p4), %vm2519_vm1, %v2518_v1  ;;  %v534_v3 = vld [vmem:[%s3171_s1] sm:$0x1] (!%p1874_p4)  ;;  %vm543_vm2 = vcmask (!%p1874_p4), 64512   ;;  %vm591_vm3 = vcmask (!%p1874_p4), 254976  }
  0xc8   : > { %s2858_s10 = scalar_lea.vmem %s3181_s11, %s1872_s19  ;;  %1979 = vmatpush3.bf16.msra.mxu0 (!%p1874_p4), %v549_v2  ;;  %593 = vst.msk [vmem:[#allocation3] sm:$0x3] (!%p1874_p4), %vm591_vm3, %v2518_v1  ;;  %v1875_v4 = vld [vmem:[#allocation10] ss:$0 sm:$0xff] (!%p1874_p4) }
  0xcb   : > { %1981 = vmatmul.mubr.msk.bf16.vlgmr.msra.gmra.mrb[0].mxu0 (!%p1874_p4), %vm543_vm2, %v534_v3 }
 0x19e   : > { %v585_v5 = vpop.f32.mrb[0].mxu0 }
 0x19f   : > { %v586_v6 = vadd.f32 %v1875_v4, %v585_v5  ;;  %v1982_v7 = vpop.f32.mrb[1].mxu0 }
 0x1a0   : > { %v588_v8 = vpop.f32.mrb[2].mxu0 }
 0x1a1   : > { %592 = vst.msk [vmem:[#allocation2] sm:$0x3] %vm591_vm3, %v586_v6  ;;  %v1983_v9 = vpop.f32.mrb[3].mxu0 }
 0x1a2 PF: > { %v594_v10 = vld [vmem:[#allocation13] sm:$0xf]  ;;  %v595_v11 = vld [vmem:[#allocation13 + $0x4] sm:$0xf]  ;;  %v596_v12 = vld [vmem:[%s3176_s6] sm:$0xf] }
 0x1a3   : > { %v597_v13 = vld [vmem:[%s3176_s6 + $0x4] sm:$0xf]  ;;  %v598_v14 = vld [vmem:[%s3176_s6 + $0x8] sm:$0xf]  ;;  %v599_v15 = vld [vmem:[%s3176_s6 + $0xc] sm:$0xf] }
 0x1a4   : > { %v2881_v16 = vld [vmem:[%s3178_s8] sm:$0xf]  ;;  %v2886_v17 = vld [vmem:[%s3178_s8 + $0x4] sm:$0xf]  ;;  %v2891_v18 = vld [vmem:[%s3178_s8 + $0x8] sm:$0xf] }
 0x1a5   : > { %v2896_v19 = vld [vmem:[%s3178_s8 + $0xc] sm:$0xf]  ;;  %v2898_v20 = vld [vmem:[#allocation14] ss:$0 sm:$0xff]  ;;  %s3217_s16 = sld [smem:[#allocation28_spill]]  ;;  %s3218_s3 = sld [smem:[#allocation29_spill]] }
 0x1a6   : > { %v621_v25 = vld [vmem:[#allocation3] sm:$0x3]  ;;  %s622_s17 = sld [smem:[#allocation6 + %s2851_s25]] }
 0x1a8   : > { %v620_v24 = vld [vmem:[#allocation2] sm:$0x3] }
 0x1ab   : > { %v2903_v21 = vld [vmem:[%s3217_s16] ss:$0 sm:$0xff]  ;;  %v2913_v23 = vld [vmem:[%s3218_s3 + $0x4] sm:$0xf] }
 0x1ac   : > { %v2908_v22 = vld [vmem:[%s3218_s3] sm:$0xf]  ;;  %p1879_p0 = scmp.eq.s32.totalorder %s622_s17, 0 }
 0x1ad   : > { %v627_v26 = vld [vmem:[%s2835_s26] sm:$0x1] (!%p1879_p0)  ;;  %vm628_vm4 = vcmask (!%p1879_p0), 122880  }
 0x1ae   : > { %626 = sbr.rel (%p1879_p0) target bundleno = 437 (0x1b5), region = 92  ;;  %629 = vst.msk [vmem:[#allocation4] sm:$0x1] (!%p1879_p0), %vm628_vm4, %v627_v26 }
 0x1b5 PF: > { %v2917_v27 = vcombine.low %v596_v12, %v597_v13  ;;  %v2919_v28 = vcombine.low %v594_v10, %v595_v11  ;;  %v2520_v29 = vmov 0.0   ;;  %v2925_v30 = vcombine.low %v598_v14, %v599_v15  ;;  %v630_v31 = vld [vmem:[#allocation4] sm:$0x1]  ;;  %s2522_s9 = smov 64   ;;  %s2523_s14 = smov 32  }
 0x1b6   : > { %1984 = vmatprep.subr.bf16.mxu0 %v2520_v29  ;;  %1992 = vmatprep.subr.bf16.mxu1 %v2520_v29  ;;  %vm694_vm5 = vcmask 130048   ;;  %vm2521_vm6 = vmmov 0   ;;  %v631_v32 = vpack.c.bf16 %v620_v24, %v620_v24  ;;  %vm644_vm7 = vcmask 261120   ;;  %s828_s15 = sadd.s32 1, %s2851_s25 }
 0x1b7   : > { %1985 = vmatpush3.bf16.msra.mxu0 %v2917_v27  ;;  %1993 = vmatpush3.bf16.msra.mxu1 %v2919_v28  ;;  %v2947_v54 = vcombine.low %v2881_v16, %v2886_v17  ;;  %v2952_v55 = vcombine.low %v2891_v18, %v2896_v19  ;;  %s829_s19 = sld [smem:[#allocation6 + %s828_s15]]  ;;  %vm826_vm8 = vcmask 123904  }
 0x1b8   : > { %1986 = vmatprep.subr.bf16.mxu0 %v2520_v29  ;;  %1994 = vmatprep.mubr.msk.bf16.mxu1 %vm2521_vm6, %v2520_v29 }
 0x1b9   : > { %1988 = vmatprep.mubr.msk.bf16.mxu0 %vm2521_vm6, %v2520_v29  ;;  %1998 = vmatprep.subr.bf16.mxu1 %v2520_v29 }
 0x1ba   : > { %1995 = vmatmul.mubr.msk.bf16.vlgmr.msra.gmra.mrb[0].mxu1 %vm694_vm5, %v630_v31 }
 0x1bb   : > { %1987 = vmatpush3.bf16.msra.mxu0 %v2925_v30  ;;  %2002 = vmatprep.mubr.msk.bf16.mxu1 %vm2521_vm6, %v2520_v29 }
 0x1bc   : > { %1999 = vmatpush3.bf16.msra.mxu1 %v2947_v54 }
 0x1bd   : > { %2000 = vmatprep.subr.bf16.mxu1 %v2520_v29  ;;  %p1889_p8 = scmp.ne.s32.totalorder %s829_s19, 0 }
 0x1be   : > { %1989 = vmatmul.mubr.msk.bf16.vlgmr.msra.gmra.mrb[0].mxu0 %vm644_vm7, %v631_v32  ;;  %v834_v2 = vld [vmem:[%s2858_s10] sm:$0x3] (!%p1889_p8)  ;;  %v836_v5 = vlaneseq (!%p1889_p8)  ;;  %v1891_v16 = vcombine.low (!%p1889_p8), %v2908_v22, %v2913_v23  ;;  %v2524_v17 = vmov (!%p1889_p8), 0.0   ;;  %vm2525_vm11 = vmmov (!%p1889_p8), 0  }
 0x1bf   : > { %2006 = vmatprep.subr.bf16.mxu0 (!%p1889_p8), %v2524_v17  ;;  %2008 = vmatprep.mubr.msk.bf16.mxu0 (!%p1889_p8), %vm2525_vm11, %v2524_v17  ;;  %vm912_vm13 = vcmask (!%p1889_p8), 122880  }
 0x1c0   : > { %2001 = vmatpush3.bf16.msra.mxu1 %v2952_v55  ;;  %v837_v6 = vand.u32 (!%p1889_p8), 127, %v836_v5  ;;  %2007 = vmatpush3.bf16.msra.mxu0 (!%p1889_p8), %v1891_v16 }
 0x28d   : > { %v732_v33 = vpop.f32.mrb[0].mxu1 }
 0x28e   : > { %v1996_v34 = vpop.f32.mrb[1].mxu1 }
 0x28f   : > { %v735_v35 = vpop.f32.mrb[2].mxu1 }
 0x290   : > { %v1997_v36 = vpop.f32.mrb[3].mxu1 }
 0x291   : > { %v682_v37 = vpop.f32.mrb[0].mxu0 }
 0x292   : > { %v733_v38 = vadd.f32 %v732_v33, %v682_v37  ;;  %v1990_v39 = vpop.f32.mrb[1].mxu0 }
 0x293   : > { %v685_v40 = vpop.f32.mrb[2].mxu0 }
 0x294   : > { %v738_v41 = vadd.f32 %v2898_v20, %v733_v38  ;;  %v1991_v42 = vpop.f32.mrb[3].mxu0 }
 0x296   : > { %2220 = vtanh.f32 %v738_v41  ;;  %v1885_v44 = vmul.f32 -1.442695, %v738_v41 }
 0x298   : > { %2222 = vpow2.f32 %v1885_v44 }
 0x2a0   : > { %v2221_v43 = vpop.eup %2220 }
 0x2a1   : > { %752 = vrot.lane.b32.xlu0 %v2221_v43, %s2522_s9 }
 0x2a2   : > { %v2223_v45 = vpop.eup %2222 }
 0x2a3   : > { %v742_v46 = vadd.f32 1.0, %v2223_v45 }
 0x2a5   : > { %747 = vrot.lane.b32.xlu0 %v621_v25, %s2523_s14  ;;  %2224 = vrcp.f32 %v742_v46 }
 0x2af   : > { %v2225_v47 = vpop.eup %2224 }
 0x313   : > { %v753_v48 = vpop.permute.xlu0 %752 }
 0x314   : > { %v755_v49 = vmul.f32 %v2225_v47, %v753_v48 }
 0x316   : > { %757 = vrot.lane.b32.xlu1 %v755_v49, %s2523_s14 }
 0x317   : > { %v748_v50 = vpop.permute.xlu0 %747 }
 0x318   : > { %v750_v51 = vmul.f32 %v2225_v47, %v748_v50 }
 0x388   : > { %v758_v52 = vpop.permute.xlu1 %757 }
 0x389   : > { %v2942_v53 = vadd.f32 %v758_v52, %v750_v51 }
 0x38b   : > { %2226 = vtanh.f32 %v2942_v53 }
 0x395   : > { %v2227_v56 = vpop.eup %2226 }
 0x396   : > { %763 = vrot.lane.b32.xlu1 %v2227_v56, %s2522_s9 }
 0x408   : > { %v764_v57 = vpop.permute.xlu1 %763 }
 0x409   : > { %v766_v58 = vmul.f32 %v2225_v47, %v764_v57 }
 0x40b   : > { %v767_v59 = vpack.c.bf16 %v766_v58, %v766_v58 }
 0x40d   : > { %769 = vrot.lane.b32.xlu0 %v767_v59, %s2523_s14 }
 0x47f   : > { %v2958_v60 = vpop.permute.xlu0 %769 }
 0x480   : > { %2003 = vmatmul.mubr.msk.bf16.vlgmr.msra.gmra.mrb[4].mxu1 %vm644_vm7, %v2958_v60 }
 0x550   : > { %833 = sbr.rel (%p1889_p8) target bundleno = 2027 (0x7eb), region = 96 }
 0x553   : > { %v820_v61 = vpop.f32.mrb[4].mxu1 }
 0x554   : > { %v821_v62 = vadd.f32 %v2903_v21, %v820_v61  ;;  %v2004_v63 = vpop.f32.mrb[5].mxu1 }
 0x555   : > { %v823_v0 = vpop.f32.mrb[6].mxu1 }
 0x556   : > { %827 = vst.msk [vmem:[%s2860_s20] sm:$0x3] %vm826_vm8, %v821_v62  ;;  %v2005_v1 = vpop.f32.mrb[7].mxu1  ;;  %v835_v3 = vadd.f32 (!%p1889_p8), %v834_v2, %v821_v62 }
 0x558   : > { %v838_v4 = vsel %vm826_vm8, %v835_v3, -inf }
 0x559   : > { %839 = vmax.xlane.f32.xlu0 %v838_v4 }
 0x5e6   : > { %v840_v7 = vpop.xlane.xlu0 %839 }
 0x5e7   : > { %vm841_vm9 = vcmp.ge.f32.partialorder %v835_v3, %v840_v7 }
 0x5e8   : > { %v842_v8 = vsel %vm841_vm9, %v837_v6, 4294967295 }
 0x5e9   : > { %v843_v9 = vsel %vm826_vm8, %v842_v8, 2147483648 }
 0x5ea   : > { %v845_v10 = vshra.s32 %v843_v9, 16  ;;  %v844_v12 = vand.u32 65535, %v843_v9 }
 0x5ec   : > { %v847_v11 = vcvt.s32.f32 %v845_v10  ;;  %v846_v14 = vcvt.s32.f32 %v844_v12 }
 0x5ee   : > { %848 = vmax.xlane.f32.xlu0 %v847_v11 }
 0x67b   : > { %v849_v13 = vpop.xlane.xlu0 %848 }
 0x67c   : > { %vm850_vm10 = vcmp.eq.f32.partialorder %v847_v11, %v849_v13  ;;  %v855_v18 = vcvt.f32.s32 %v849_v13 }
 0x67d   : > { %v851_v15 = vsel %vm850_vm10, %v846_v14, -inf }
 0x67e   : > { %852 = vmax.xlane.f32.xlu1 %v851_v15  ;;  %v856_v24 = vshll.u32 %v855_v18, 16 }
 0x70b   : > { %v853_v19 = vpop.xlane.xlu1 %852 }
 0x70c   : > { %v854_v25 = vcvt.f32.s32 %v853_v19 }
 0x70e   : > { %v857_v26 = vadd.s32 %v856_v24, %v854_v25 }
 0x710   : > { %vm858_vm12 = vcmp.eq.s32.totalorder %v837_v6, %v857_v26 }
 0x711   : > { %v1890_v31 = vsel %vm858_vm12, 1.0, %v2524_v17 }
 0x712   : > { %v861_v32 = vpack.c.bf16 %v1890_v31, %v1890_v31 }
 0x714   : > { %2009 = vmatmul.mubr.msk.bf16.vlgmr.msra.gmra.mrb[0].mxu0 %vm694_vm5, %v861_v32 }
 0x7e7   : > { %v905_v33 = vpop.f32.mrb[0].mxu0 }
 0x7e8   : > { %v911_v34 = vpack.c.bf16 %v905_v33, %v905_v33  ;;  %v2010_v35 = vpop.f32.mrb[1].mxu0 }
 0x7e9   : > { %v908_v36 = vpop.f32.mrb[2].mxu0 }
 0x7ea   : > { %913 = vst.msk [vmem:[#allocation4] sm:$0x1] %vm912_vm13, %v911_v34  ;;  %v2011_v37 = vpop.f32.mrb[3].mxu0 }
 0x7eb PF: > { %s914_s16 = sld [smem:[#allocation6 + %s828_s15]] }
 0x7f1   : > { %p1893_p12 = scmp.eq.s32.totalorder %s914_s16, 0 }
 0x7f2   : > { %v1894_v38 = vld [vmem:[%s2835_s26 + $0x1] sm:$0x1] (!%p1893_p12)  ;;  %vm921_vm14 = vcmask (!%p1893_p12), 122880  }
 0x7f3   : > { %918 = sbr.rel (%p1893_p12) target bundleno = 2042 (0x7fa), region = 100  ;;  %922 = vst.msk [vmem:[#allocation4] sm:$0x1] (!%p1893_p12), %vm921_vm14, %v1894_v38 }
 0x7fa PF: > { %2012 = vmatprep.subr.bf16.mxu0 %v2520_v29  ;;  %2020 = vmatprep.subr.bf16.mxu1 %v2520_v29  ;;  %v923_v39 = vld [vmem:[#allocation4] sm:$0x1]  ;;  %s1081_s23 = sadd.s32 2, %s2851_s25 }
 0x7fb   : > { %2013 = vmatpush3.bf16.msra.mxu0 %v2917_v27  ;;  %2021 = vmatpush3.bf16.msra.mxu1 %v2919_v28  ;;  %s1082_s13 = sld [smem:[#allocation6 + %s1081_s23]] }
 0x7fc   : > { %2014 = vmatprep.subr.bf16.mxu0 %v2520_v29  ;;  %2022 = vmatprep.mubr.msk.bf16.mxu1 %vm2521_vm6, %v2520_v29 }
 0x7fd   : > { %2016 = vmatprep.mubr.msk.bf16.mxu0 %vm2521_vm6, %v2520_v29  ;;  %2026 = vmatprep.subr.bf16.mxu1 %v2520_v29 }
 0x7fe   : > { %2023 = vmatmul.mubr.msk.bf16.vlgmr.msra.gmra.mrb[0].mxu1 %vm694_vm5, %v923_v39 }
 0x7ff   : > { %2015 = vmatpush3.bf16.msra.mxu0 %v2925_v30  ;;  %2027 = vmatpush3.bf16.msra.mxu1 %v2947_v54 }
 0x800   : > { %2028 = vmatprep.subr.bf16.mxu1 %v2520_v29  ;;  %2030 = vmatprep.mubr.msk.bf16.mxu1 %vm2521_vm6, %v2520_v29 }
 0x801   : > { %p1900_p3 = scmp.ne.s32.totalorder %s1082_s13, 0 }
 0x802   : > { %2017 = vmatmul.mubr.msk.bf16.vlgmr.msra.gmra.mrb[0].mxu0 %vm644_vm7, %v2958_v60  ;;  %v1901_v8 = vld [vmem:[%s2858_s10 + $0x2] sm:$0x3] (!%p1900_p3)  ;;  %v1090_v11 = vlaneseq (!%p1900_p3)  ;;  %v1903_v26 = vcombine.low (!%p1900_p3), %v2908_v22, %v2913_v23  ;;  %v2526_v31 = vmov (!%p1900_p3), 0.0   ;;  %vm2527_vm1 = vmmov (!%p1900_p3), 0  }
 0x803   : > { %2029 = vmatpush3.bf16.msra.mxu1 %v2952_v55  ;;  %2034 = vmatprep.subr.bf16.mxu0 (!%p1900_p3), %v2526_v31  ;;  %vm1166_vm3 = vcmask (!%p1900_p3), 122880  }
 0x804   : > { %v1091_v12 = vand.u32 (!%p1900_p3), 127, %v1090_v11  ;;  %2035 = vmatpush3.bf16.msra.mxu0 (!%p1900_p3), %v1903_v26  ;;  %2036 = vmatprep.mubr.msk.bf16.mxu0 (!%p1900_p3), %vm2527_vm1, %v2526_v31 }
 0x8d1   : > { %v1001_v40 = vpop.f32.mrb[0].mxu1 }
 0x8d2   : > { %v2024_v41 = vpop.f32.mrb[1].mxu1 }
 0x8d3   : > { %v1004_v42 = vpop.f32.mrb[2].mxu1 }
 0x8d4   : > { %v2025_v43 = vpop.f32.mrb[3].mxu1 }
 0x8d5   : > { %v958_v44 = vpop.f32.mrb[0].mxu0 }
 0x8d6   : > { %v1002_v45 = vadd.f32 %v1001_v40, %v958_v44  ;;  %v2018_v46 = vpop.f32.mrb[1].mxu0 }
 0x8d7   : > { %v961_v47 = vpop.f32.mrb[2].mxu0 }
 0x8d8   : > { %v1007_v48 = vadd.f32 %v2898_v20, %v1002_v45  ;;  %v2019_v49 = vpop.f32.mrb[3].mxu0 }
 0x8da   : > { %2228 = vtanh.f32 %v1007_v48  ;;  %v1897_v51 = vmul.f32 -1.442695, %v1007_v48 }
 0x8dc   : > { %2230 = vpow2.f32 %v1897_v51 }
 0x8e4   : > { %v2229_v50 = vpop.eup %2228 }
 0x8e5   : > { %1017 = vrot.lane.b32.xlu0 %v2229_v50, %s2522_s9 }
 0x8e6   : > { %v2231_v52 = vpop.eup %2230 }
 0x8e7   : > { %v1011_v56 = vadd.f32 1.0, %v2231_v52 }
 0x8e9   : > { %2232 = vrcp.f32 %v1011_v56 }
 0x8f3   : > { %v2233_v57 = vpop.eup %2232 }
 0x8f4   : > { %v1015_v60 = vmul.f32 %v2233_v57, %v2942_v53 }
 0x957   : > { %v1018_v58 = vpop.permute.xlu0 %1017 }
 0x958   : > { %v1020_v59 = vmul.f32 %v2233_v57, %v1018_v58 }
 0x95a   : > { %1022 = vrot.lane.b32.xlu0 %v1020_v59, %s2523_s14 }
 0x9cc   : > { %v1023_v61 = vpop.permute.xlu0 %1022 }
 0x9cd   : > { %v3000_v62 = vadd.f32 %v1023_v61, %v1015_v60 }
 0x9cf   : > { %2234 = vtanh.f32 %v3000_v62 }
 0x9d9   : > { %v2235_v63 = vpop.eup %2234 }
 0x9da   : > { %1028 = vrot.lane.b32.xlu1 %v2235_v63, %s2522_s9 }
 0xa4c   : > { %v1029_v0 = vpop.permute.xlu1 %1028 }
 0xa4d   : > { %v1031_v1 = vmul.f32 %v2233_v57, %v1029_v0 }
 0xa4f   : > { %v1032_v2 = vpack.c.bf16 %v1031_v1, %v1031_v1 }
 0xa51   : > { %1034 = vrot.lane.b32.xlu1 %v1032_v2, %s2523_s14 }
 0xac3   : > { %v3005_v3 = vpop.permute.xlu1 %1034 }
 0xac4   : > { %2031 = vmatmul.mubr.msk.bf16.vlgmr.msra.gmra.mrb[4].mxu1 %vm644_vm7, %v3005_v3 }
 0xb94   : > { %1086 = sbr.rel (%p1900_p3) target bundleno = 3631 (0xe2f), region = 104 }
 0xb97   : > { %v1073_v53 = vpop.f32.mrb[4].mxu1 }
 0xb98   : > { %v1074_v4 = vadd.f32 %v2903_v21, %v1073_v53  ;;  %v2032_v5 = vpop.f32.mrb[5].mxu1 }
 0xb99   : > { %v1076_v6 = vpop.f32.mrb[6].mxu1 }
 0xb9a   : > { %1899 = vst.msk [vmem:[%s2860_s20 + $0x2] sm:$0x3] %vm826_vm8, %v1074_v4  ;;  %v2033_v7 = vpop.f32.mrb[7].mxu1  ;;  %v1089_v9 = vadd.f32 (!%p1900_p3), %v1901_v8, %v1074_v4 }
 0xb9c   : > { %v1092_v10 = vsel %vm826_vm8, %v1089_v9, -inf }
 0xb9d   : > { %1093 = vmax.xlane.f32.xlu0 %v1092_v10 }
 0xc2a   : > { %v1094_v13 = vpop.xlane.xlu0 %1093 }
 0xc2b   : > { %vm1095_vm15 = vcmp.ge.f32.partialorder %v1089_v9, %v1094_v13 }
 0xc2c   : > { %v1096_v14 = vsel %vm1095_vm15, %v1091_v12, 4294967295 }
 0xc2d   : > { %v1097_v15 = vsel %vm826_vm8, %v1096_v14, 2147483648 }
 0xc2e   : > { %v1099_v16 = vshra.s32 %v1097_v15, 16  ;;  %v1098_v18 = vand.u32 65535, %v1097_v15 }
 0xc30   : > { %v1101_v17 = vcvt.s32.f32 %v1099_v16  ;;  %v1100_v24 = vcvt.s32.f32 %v1098_v18 }
 0xc32   : > { %1102 = vmax.xlane.f32.xlu0 %v1101_v17 }
 0xcbf   : > { %v1103_v19 = vpop.xlane.xlu0 %1102 }
 0xcc0   : > { %vm1104_vm0 = vcmp.eq.f32.partialorder %v1101_v17, %v1103_v19  ;;  %v1109_v32 = vcvt.f32.s32 %v1103_v19 }
 0xcc1   : > { %v1105_v25 = vsel %vm1104_vm0, %v1100_v24, -inf }
 0xcc2   : > { %1106 = vmax.xlane.f32.xlu1 %v1105_v25  ;;  %v1110_v34 = vshll.u32 %v1109_v32, 16 }
 0xd4f   : > { %v1107_v33 = vpop.xlane.xlu1 %1106 }
 0xd50   : > { %v1108_v35 = vcvt.f32.s32 %v1107_v33 }
 0xd52   : > { %v1111_v36 = vadd.s32 %v1110_v34, %v1108_v35 }
 0xd54   : > { %vm1112_vm2 = vcmp.eq.s32.totalorder %v1091_v12, %v1111_v36 }
 0xd55   : > { %v1902_v37 = vsel %vm1112_vm2, 1.0, %v2526_v31 }
 0xd56   : > { %v1115_v38 = vpack.c.bf16 %v1902_v37, %v1902_v37 }
 0xd58   : > { %2037 = vmatmul.mubr.msk.bf16.vlgmr.msra.gmra.mrb[0].mxu0 %vm694_vm5, %v1115_v38 }
 0xe2b   : > { %v1159_v39 = vpop.f32.mrb[0].mxu0 }
 0xe2c   : > { %v1165_v40 = vpack.c.bf16 %v1159_v39, %v1159_v39  ;;  %v2038_v41 = vpop.f32.mrb[1].mxu0 }
 0xe2d   : > { %v1162_v42 = vpop.f32.mrb[2].mxu0 }
 0xe2e   : > { %1167 = vst.msk [vmem:[#allocation4] sm:$0x1] %vm1166_vm3, %v1165_v40  ;;  %v2039_v43 = vpop.f32.mrb[3].mxu0 }
 0xe2f PF: > { %s1168_s12 = sld [smem:[#allocation6 + %s1081_s23]] }
 0xe35   : > { %p1905_p7 = scmp.eq.s32.totalorder %s1168_s12, 0 }
 0xe36   : > { %v1906_v44 = vld [vmem:[%s2835_s26 + $0x2] sm:$0x1] (!%p1905_p7)  ;;  %vm1175_vm4 = vcmask (!%p1905_p7), 122880  }
 0xe37   : > { %1172 = sbr.rel (%p1905_p7) target bundleno = 3646 (0xe3e), region = 108  ;;  %1176 = vst.msk [vmem:[#allocation4] sm:$0x1] (!%p1905_p7), %vm1175_vm4, %v1906_v44 }
 0xe3e PF: > { %2040 = vmatprep.subr.bf16.mxu0 %v2520_v29  ;;  %2048 = vmatprep.subr.bf16.mxu1 %v2520_v29  ;;  %v1177_v45 = vld [vmem:[#allocation4] sm:$0x1]  ;;  %s1335_s24 = sadd.s32 3, %s2851_s25 }
 0xe3f   : > { %2041 = vmatpush3.bf16.msra.mxu0 %v2917_v27  ;;  %2049 = vmatpush3.bf16.msra.mxu1 %v2919_v28  ;;  %s1336_s17 = sld [smem:[#allocation6 + %s1335_s24]] }
 0xe40   : > { %2042 = vmatprep.subr.bf16.mxu0 %v2520_v29  ;;  %2050 = vmatprep.mubr.msk.bf16.mxu1 %vm2521_vm6, %v2520_v29 }
 0xe41   : > { %2044 = vmatprep.mubr.msk.bf16.mxu0 %vm2521_vm6, %v2520_v29  ;;  %2054 = vmatprep.subr.bf16.mxu1 %v2520_v29 }
 0xe42   : > { %2051 = vmatmul.mubr.msk.bf16.vlgmr.msra.gmra.mrb[0].mxu1 %vm694_vm5, %v1177_v45 }
 0xe43   : > { %2043 = vmatpush3.bf16.msra.mxu0 %v2925_v30  ;;  %2055 = vmatpush3.bf16.msra.mxu1 %v2947_v54 }
 0xe44   : > { %2056 = vmatprep.subr.bf16.mxu1 %v2520_v29  ;;  %2058 = vmatprep.mubr.msk.bf16.mxu1 %vm2521_vm6, %v2520_v29 }
 0xe45   : > { %p1912_p6 = scmp.ne.s32.totalorder %s1336_s17, 0 }
 0xe46   : > { %2045 = vmatmul.mubr.msk.bf16.vlgmr.msra.gmra.mrb[0].mxu0 %vm644_vm7, %v3005_v3  ;;  %v1913_v14 = vld [vmem:[%s2858_s10 + $0x4] sm:$0x3] (!%p1912_p6)  ;;  %v1344_v17 = vlaneseq (!%p1912_p6)  ;;  %v1915_v36 = vcombine.low (!%p1912_p6), %v2908_v22, %v2913_v23  ;;  %v2528_v37 = vmov (!%p1912_p6), 0.0   ;;  %vm2529_vm11 = vmmov (!%p1912_p6), 0  }
 0xe47   : > { %2057 = vmatpush3.bf16.msra.mxu1 %v2952_v55  ;;  %2062 = vmatprep.subr.bf16.mxu0 (!%p1912_p6), %v2528_v37  ;;  %vm1420_vm13 = vcmask (!%p1912_p6), 122880  }
 0xe48   : > { %v1345_v18 = vand.u32 (!%p1912_p6), 127, %v1344_v17  ;;  %2063 = vmatpush3.bf16.msra.mxu0 (!%p1912_p6), %v1915_v36  ;;  %2064 = vmatprep.mubr.msk.bf16.mxu0 (!%p1912_p6), %vm2529_vm11, %v2528_v37 }
 0xf15   : > { %v1255_v46 = vpop.f32.mrb[0].mxu1 }
 0xf16   : > { %v2052_v47 = vpop.f32.mrb[1].mxu1 }
 0xf17   : > { %v1258_v48 = vpop.f32.mrb[2].mxu1 }
 0xf18   : > { %v2053_v49 = vpop.f32.mrb[3].mxu1 }
 0xf19   : > { %v1212_v50 = vpop.f32.mrb[0].mxu0 }
 0xf1a   : > { %v1256_v51 = vadd.f32 %v1255_v46, %v1212_v50  ;;  %v2046_v52 = vpop.f32.mrb[1].mxu0 }
 0xf1b   : > { %v1215_v56 = vpop.f32.mrb[2].mxu0 }
 0xf1c   : > { %v1261_v57 = vadd.f32 %v2898_v20, %v1256_v51  ;;  %v2047_v58 = vpop.f32.mrb[3].mxu0 }
 0xf1e   : > { %2236 = vtanh.f32 %v1261_v57  ;;  %v1909_v60 = vmul.f32 -1.442695, %v1261_v57 }
 0xf20   : > { %2238 = vpow2.f32 %v1909_v60 }
 0xf28   : > { %v2237_v59 = vpop.eup %2236 }
 0xf29   : > { %1271 = vrot.lane.b32.xlu0 %v2237_v59, %s2522_s9 }
 0xf2a   : > { %v2239_v61 = vpop.eup %2238 }
 0xf2b   : > { %v1265_v63 = vadd.f32 1.0, %v2239_v61 }
 0xf2d   : > { %2240 = vrcp.f32 %v1265_v63 }
 0xf37   : > { %v2241_v0 = vpop.eup %2240 }
 0xf38   : > { %v1269_v3 = vmul.f32 %v2241_v0, %v3000_v62 }
 0xf9b   : > { %v1272_v1 = vpop.permute.xlu0 %1271 }
 0xf9c   : > { %v1274_v2 = vmul.f32 %v2241_v0, %v1272_v1 }
 0xf9e   : > { %1276 = vrot.lane.b32.xlu0 %v1274_v2, %s2523_s14 }
0x1010   : > { %v1277_v53 = vpop.permute.xlu0 %1276 }
0x1011   : > { %v3047_v4 = vadd.f32 %v1277_v53, %v1269_v3 }
0x1013   : > { %2242 = vtanh.f32 %v3047_v4 }
0x101d   : > { %v2243_v5 = vpop.eup %2242 }
0x101e   : > { %1282 = vrot.lane.b32.xlu1 %v2243_v5, %s2522_s9 }
0x1090   : > { %v1283_v6 = vpop.permute.xlu1 %1282 }
0x1091   : > { %v1285_v7 = vmul.f32 %v2241_v0, %v1283_v6 }
0x1093   : > { %v1286_v8 = vpack.c.bf16 %v1285_v7, %v1285_v7 }
0x1095   : > { %1288 = vrot.lane.b32.xlu1 %v1286_v8, %s2523_s14 }
0x1107   : > { %v3052_v9 = vpop.permute.xlu1 %1288 }
0x1108   : > { %2059 = vmatmul.mubr.msk.bf16.vlgmr.msra.gmra.mrb[4].mxu1 %vm644_vm7, %v3052_v9 }
0x11d8   : > { %1340 = sbr.rel (%p1912_p6) target bundleno = 5235 (0x1473), region = 112 }
0x11db   : > { %v1327_v62 = vpop.f32.mrb[4].mxu1 }
0x11dc   : > { %v1328_v10 = vadd.f32 %v2903_v21, %v1327_v62  ;;  %v2060_v11 = vpop.f32.mrb[5].mxu1 }
0x11dd   : > { %v1330_v12 = vpop.f32.mrb[6].mxu1 }
0x11de   : > { %1911 = vst.msk [vmem:[%s2860_s20 + $0x4] sm:$0x3] %vm826_vm8, %v1328_v10  ;;  %v2061_v13 = vpop.f32.mrb[7].mxu1  ;;  %v1343_v15 = vadd.f32 (!%p1912_p6), %v1913_v14, %v1328_v10 }
0x11e0   : > { %v1346_v16 = vsel %vm826_vm8, %v1343_v15, -inf }
0x11e1   : > { %1347 = vmax.xlane.f32.xlu0 %v1346_v16 }
0x126e   : > { %v1348_v19 = vpop.xlane.xlu0 %1347 }
0x126f   : > { %vm1349_vm9 = vcmp.ge.f32.partialorder %v1343_v15, %v1348_v19 }
0x1270   : > { %v1350_v24 = vsel %vm1349_vm9, %v1345_v18, 4294967295 }
0x1271   : > { %v1351_v25 = vsel %vm826_vm8, %v1350_v24, 2147483648 }
0x1272   : > { %v1353_v26 = vshra.s32 %v1351_v25, 16  ;;  %v1352_v32 = vand.u32 65535, %v1351_v25 }
0x1274   : > { %v1355_v31 = vcvt.s32.f32 %v1353_v26  ;;  %v1354_v34 = vcvt.s32.f32 %v1352_v32 }
0x1276   : > { %1356 = vmax.xlane.f32.xlu0 %v1355_v31 }
0x1303   : > { %v1357_v33 = vpop.xlane.xlu0 %1356 }
0x1304   : > { %vm1358_vm10 = vcmp.eq.f32.partialorder %v1355_v31, %v1357_v33  ;;  %v1363_v38 = vcvt.f32.s32 %v1357_v33 }
0x1305   : > { %v1359_v35 = vsel %vm1358_vm10, %v1354_v34, -inf }
0x1306   : > { %1360 = vmax.xlane.f32.xlu1 %v1359_v35  ;;  %v1364_v40 = vshll.u32 %v1363_v38, 16 }
0x1393   : > { %v1361_v39 = vpop.xlane.xlu1 %1360 }
0x1394   : > { %v1362_v41 = vcvt.f32.s32 %v1361_v39 }
0x1396   : > { %v1365_v42 = vadd.s32 %v1364_v40, %v1362_v41 }
0x1398   : > { %vm1366_vm12 = vcmp.eq.s32.totalorder %v1345_v18, %v1365_v42 }
0x1399   : > { %v1914_v43 = vsel %vm1366_vm12, 1.0, %v2528_v37 }
0x139a   : > { %v1369_v44 = vpack.c.bf16 %v1914_v43, %v1914_v43 }
0x139c   : > { %2065 = vmatmul.mubr.msk.bf16.vlgmr.msra.gmra.mrb[0].mxu0 %vm694_vm5, %v1369_v44 }
0x146f   : > { %v1413_v45 = vpop.f32.mrb[0].mxu0 }
0x1470   : > { %v1419_v46 = vpack.c.bf16 %v1413_v45, %v1413_v45  ;;  %v2066_v47 = vpop.f32.mrb[1].mxu0 }
0x1471   : > { %v1416_v48 = vpop.f32.mrb[2].mxu0 }
0x1472   : > { %1421 = vst.msk [vmem:[#allocation4] sm:$0x1] %vm1420_vm13, %v1419_v46  ;;  %v2067_v49 = vpop.f32.mrb[3].mxu0 }
0x1473 PF: > { %s1422_s15 = sld [smem:[#allocation6 + %s1335_s24]] }
0x1479   : > { %p1917_p2 = scmp.eq.s32.totalorder %s1422_s15, 0 }
0x147a   : > { %v1918_v50 = vld [vmem:[%s2835_s26 + $0x3] sm:$0x1] (!%p1917_p2)  ;;  %vm1429_vm14 = vcmask (!%p1917_p2), 122880  }
0x147b   : > { %1426 = sbr.rel (%p1917_p2) target bundleno = 5250 (0x1482), region = 116  ;;  %1430 = vst.msk [vmem:[#allocation4] sm:$0x1] (!%p1917_p2), %vm1429_vm14, %v1918_v50 }
0x1482 PF: > { %2068 = vmatprep.subr.bf16.mxu0 %v2520_v29  ;;  %2076 = vmatprep.subr.bf16.mxu1 %v2520_v29  ;;  %v1431_v51 = vld [vmem:[#allocation4] sm:$0x1]  ;;  %s1589_s26 = sadd.s32 4, %s2851_s25 }
0x1483   : > { %2069 = vmatpush3.bf16.msra.mxu0 %v2917_v27  ;;  %2077 = vmatpush3.bf16.msra.mxu1 %v2919_v28  ;;  %s1590_s19 = sld [smem:[#allocation6 + %s1589_s26]] }
0x1484   : > { %2070 = vmatprep.subr.bf16.mxu0 %v2520_v29  ;;  %2078 = vmatprep.mubr.msk.bf16.mxu1 %vm2521_vm6, %v2520_v29 }
0x1485   : > { %2072 = vmatprep.mubr.msk.bf16.mxu0 %vm2521_vm6, %v2520_v29  ;;  %2082 = vmatprep.subr.bf16.mxu1 %v2520_v29 }
0x1486   : > { %2079 = vmatmul.mubr.msk.bf16.vlgmr.msra.gmra.mrb[0].mxu1 %vm694_vm5, %v1431_v51 }
0x1487   : > { %2071 = vmatpush3.bf16.msra.mxu0 %v2925_v30  ;;  %2083 = vmatpush3.bf16.msra.mxu1 %v2947_v54 }
0x1488   : > { %2084 = vmatprep.subr.bf16.mxu1 %v2520_v29  ;;  %2086 = vmatprep.mubr.msk.bf16.mxu1 %vm2521_vm6, %v2520_v29 }
0x1489   : > { %p1924_p9 = scmp.ne.s32.totalorder %s1590_s19, 0 }
0x148a   : > { %2073 = vmatmul.mubr.msk.bf16.vlgmr.msra.gmra.mrb[0].mxu0 %vm644_vm7, %v3052_v9  ;;  %v1925_v13 = vld [vmem:[%s2858_s10 + $0x6] sm:$0x3] (!%p1924_p9)  ;;  %v1598_v16 = vlaneseq (!%p1924_p9)  ;;  %v1927_v34 = vcombine.low (!%p1924_p9), %v2908_v22, %v2913_v23  ;;  %v2530_v35 = vmov (!%p1924_p9), 0.0   ;;  %vm2531_vm15 = vmmov (!%p1924_p9), 0  }
0x148b   : > { %2085 = vmatpush3.bf16.msra.mxu1 %v2952_v55  ;;  %2090 = vmatprep.subr.bf16.mxu0 (!%p1924_p9), %v2530_v35  ;;  %vm1674_vm0 = vcmask (!%p1924_p9), 122880  }
0x148c   : > { %v1599_v17 = vand.u32 (!%p1924_p9), 127, %v1598_v16  ;;  %2091 = vmatpush3.bf16.msra.mxu0 (!%p1924_p9), %v1927_v34  ;;  %2092 = vmatprep.mubr.msk.bf16.mxu0 (!%p1924_p9), %vm2531_vm15, %v2530_v35 }
0x1559   : > { %v1509_v27 = vpop.f32.mrb[0].mxu1 }
0x155a   : > { %v2080_v28 = vpop.f32.mrb[1].mxu1 }
0x155b   : > { %v1512_v52 = vpop.f32.mrb[2].mxu1 }
0x155c   : > { %v2081_v56 = vpop.f32.mrb[3].mxu1 }
0x155d   : > { %v1466_v57 = vpop.f32.mrb[0].mxu0 }
0x155e   : > { %v1510_v58 = vadd.f32 %v1509_v27, %v1466_v57  ;;  %v2074_v59 = vpop.f32.mrb[1].mxu0 }
0x155f   : > { %v1469_v30 = vpop.f32.mrb[2].mxu0 }
0x1560   : > { %v1515_v54 = vadd.f32 %v2898_v20, %v1510_v58  ;;  %v2075_v60 = vpop.f32.mrb[3].mxu0 }
0x1562   : > { %2244 = vtanh.f32 %v1515_v54  ;;  %v1921_v29 = vmul.f32 -1.442695, %v1515_v54 }
0x1564   : > { %2246 = vpow2.f32 %v1921_v29 }
0x156c   : > { %v2245_v61 = vpop.eup %2244 }
0x156d   : > { %1525 = vrot.lane.b32.xlu0 %v2245_v61, %s2522_s9 }
0x156e   : > { %v2247_v63 = vpop.eup %2246 }
0x156f   : > { %v1519_v0 = vadd.f32 1.0, %v2247_v63 }
0x1571   : > { %2248 = vrcp.f32 %v1519_v0 }
0x157b   : > { %v2249_v55 = vpop.eup %2248 }
0x157c   : > { %v1523_v3 = vmul.f32 %v2249_v55, %v3047_v4 }
0x15df   : > { %v1526_v1 = vpop.permute.xlu0 %1525 }
0x15e0   : > { %v1528_v2 = vmul.f32 %v2249_v55, %v1526_v1 }
0x15e2   : > { %1530 = vrot.lane.b32.xlu0 %v1528_v2, %s2523_s14 }
0x1654   : > { %v1531_v53 = vpop.permute.xlu0 %1530 }
0x1655   : > { %v3094_v20 = vadd.f32 %v1531_v53, %v1523_v3 }
0x1657   : > { %2250 = vtanh.f32 %v3094_v20 }
0x1661   : > { %v2251_v5 = vpop.eup %2250 }
0x1662   : > { %1536 = vrot.lane.b32.xlu1 %v2251_v5, %s2522_s9 }
0x16d4   : > { %v1537_v6 = vpop.permute.xlu1 %1536 }
0x16d5   : > { %v1539_v7 = vmul.f32 %v2249_v55, %v1537_v6 }
0x16d7   : > { %v1540_v8 = vpack.c.bf16 %v1539_v7, %v1539_v7 }
0x16d9   : > { %1542 = vrot.lane.b32.xlu1 %v1540_v8, %s2523_s14 }
0x174b   : > { %v1543_v9 = vpop.permute.xlu1 %1542 }
0x174c   : > { %2087 = vmatmul.mubr.msk.bf16.vlgmr.msra.gmra.mrb[4].mxu1 %vm644_vm7, %v1543_v9 }
0x181c   : > { %1594 = sbr.rel (%p1924_p9) target bundleno = 6839 (0x1ab7), region = 120 }
0x181f   : > { %v1581_v4 = vpop.f32.mrb[4].mxu1 }
0x1820   : > { %v1582_v62 = vadd.f32 %v2903_v21, %v1581_v4  ;;  %v2088_v10 = vpop.f32.mrb[5].mxu1 }
0x1821   : > { %v1584_v11 = vpop.f32.mrb[6].mxu1 }
0x1822   : > { %1923 = vst.msk [vmem:[%s2860_s20 + $0x6] sm:$0x3] %vm826_vm8, %v1582_v62  ;;  %v2089_v12 = vpop.f32.mrb[7].mxu1  ;;  %v1597_v14 = vadd.f32 (!%p1924_p9), %v1925_v13, %v1582_v62 }
0x1824   : > { %v1600_v15 = vsel %vm826_vm8, %v1597_v14, -inf }
0x1825   : > { %1601 = vmax.xlane.f32.xlu0 %v1600_v15 }
0x18b2   : > { %v1602_v18 = vpop.xlane.xlu0 %1601 }
0x18b3   : > { %vm1603_vm6 = vcmp.ge.f32.partialorder %v1597_v14, %v1602_v18 }
0x18b4   : > { %v1604_v19 = vsel %vm1603_vm6, %v1599_v17, 4294967295 }
0x18b5   : > { %v1605_v21 = vsel %vm826_vm8, %v1604_v19, 2147483648 }
0x18b6   : > { %v1607_v24 = vshra.s32 %v1605_v21, 16  ;;  %v1606_v26 = vand.u32 65535, %v1605_v21 }
0x18b8   : > { %v1609_v25 = vcvt.s32.f32 %v1607_v24  ;;  %v1608_v32 = vcvt.s32.f32 %v1606_v26 }
0x18ba   : > { %1610 = vmax.xlane.f32.xlu0 %v1609_v25 }
0x1947   : > { %v1611_v31 = vpop.xlane.xlu0 %1610 }
0x1948   : > { %vm1612_vm7 = vcmp.eq.f32.partialorder %v1609_v25, %v1611_v31  ;;  %v1617_v36 = vcvt.f32.s32 %v1611_v31 }
0x1949   : > { %v1613_v33 = vsel %vm1612_vm7, %v1608_v32, -inf }
0x194a   : > { %1614 = vmax.xlane.f32.xlu1 %v1613_v33  ;;  %v1618_v38 = vshll.u32 %v1617_v36, 16 }
0x19d7   : > { %v1615_v37 = vpop.xlane.xlu1 %1614 }
0x19d8   : > { %v1616_v39 = vcvt.f32.s32 %v1615_v37 }
0x19da   : > { %v1619_v40 = vadd.s32 %v1618_v38, %v1616_v39 }
0x19dc   : > { %vm1620_vm8 = vcmp.eq.s32.totalorder %v1599_v17, %v1619_v40 }
0x19dd   : > { %v1926_v41 = vsel %vm1620_vm8, 1.0, %v2530_v35 }
0x19de   : > { %v1623_v42 = vpack.c.bf16 %v1926_v41, %v1926_v41 }
0x19e0   : > { %2093 = vmatmul.mubr.msk.bf16.vlgmr.msra.gmra.mrb[0].mxu0 %vm694_vm5, %v1623_v42 }
0x1ab3   : > { %v1667_v43 = vpop.f32.mrb[0].mxu0 }
0x1ab4   : > { %v1673_v44 = vpack.c.bf16 %v1667_v43, %v1667_v43  ;;  %v2094_v45 = vpop.f32.mrb[1].mxu0 }
0x1ab5   : > { %v1670_v22 = vpop.f32.mrb[2].mxu0 }
0x1ab6   : > { %1675 = vst.msk [vmem:[#allocation4] sm:$0x1] %vm1674_vm0, %v1673_v44  ;;  %v2095_v23 = vpop.f32.mrb[3].mxu0 }
0x1ab7 PF: > { %1677 = vrot.lane.b32.xlu0 %v1539_v7, %s2523_s14  ;;  %s1935_s25 = sshll.u32 %s2498_s28, 7  ;;  %s1702_s10 = sshll.u32 %s2860_s20, 4  ;;  %s3118_s10 = int_to_ptr.vmem [resolvable:$true] %s1702_s10 }
0x1ab8   : > { %s3219_s23 = sld [smem:[#allocation30_spill]]  ;;  %s2532_s12 = smov 96  }
0x1ab9   : > { %s1688_s24 = scalar_lea.sflag [#allocation9], %s2832_s21  ;;  %s2406_s17 = scalar_lea.vmem %s3118_s10, 128 }
0x1aba   : > { %p2407_p13 = scmp.ne.s32.totalorder %s3118_s10, %s2406_s17  ;;  %s2533_s28 = smov [#allocation16]  }
0x1abb   : > { %1683 = vrot.lane.b32.xlu0 %v3094_v20, %s2532_s12  ;;  %s2410_s20 = sshll.u32 %s2533_s28, 4  ;;  %s2411_s20 = int_to_ptr.vmem [resolvable:$false] %s2410_s20 }
0x1abc   : > { %p2408_p5 = pnand %p2407_p13, %p2769_p11  ;;  %s2412_s15 = scalar_lea.vmem %s2411_s20, 256 }
0x1abd   : > { %p2413_p1 = scmp.lt.s32.totalorder %s3118_s10, %s2411_s20  ;;  %p2414_p4 = scmp.lt.s32.totalorder %s2412_s15, %s2406_s17 }
0x1abe   : > { %s3116_s13 = scalar_lea.hbm %s3219_s23, %s1935_s25  ;;  %p2409_p10 = pneg %p2408_p5 }
0x1abf   : > { %p2415_p0 = por %p2414_p4, %p2413_p1 }
0x1ac1   : > { %p2416_p8 = pnand %p2415_p0, %p2409_p10 }
0x1ac3   : > { %2419 = shalt.err (!%p2416_p8)
}
0x1ac4   : > { %s2420_s26 = scalar_lea.hbm %s3116_s13, 128  ;;  %s2424_s9 = scalar_lea.hbm %s3219_s23, 256 }
0x1ac5   : > { %p2421_p12 = scmp.ne.s32.totalorder %s3116_s13, %s2420_s26  ;;  %p2425_p6 = scmp.lt.u32.totalorder %s3116_s13, %s3219_s23 }
0x1ac6   : > { %p2426_p2 = scmp.lt.u32.totalorder %s2424_s9, %s2420_s26  ;;  %p2428_p13 = scmp.lt.u32.totalorder %s2420_s26, %s3116_s13 }
0x1ac7   : > { %p2422_p3 = pnand %p2421_p12, %p2769_p11 }
0x1ac8   : > { %p2427_p9 = por %p2426_p2, %p2425_p6 }
0x1ac9   : > { %p2423_p7 = pneg %p2422_p3 }
0x1aca   : > { %p2429_p5 = por %p2428_p13, %p2427_p9 }
0x1acc   : > { %p2430_p10 = pnand %p2429_p5, %p2423_p7 }
0x1ace   : > { %2433 = shalt.err (!%p2430_p10)
}
0x1acf   : > { %s2534_s17 = smov 2   ;;  %vm1680_vm5 = vcmask 254976  }
0x1ad0   : > { %2114 = dma.vmem_to_hbm [thread:$0]  (%p2769_p11), %s3118_s10, 128, %s3116_s13, %s1688_s24, %s2523_s14, %s2523_s14, %s2534_s17  }
0x1b29   : > { %v1678_v46 = vpop.permute.xlu0 %1677 }
0x1b2a   : > { %1681 = vst.msk [vmem:[#allocation2] sm:$0x3] %vm1680_vm5, %v1678_v46 }
0x1b2d   : > { %v1684_v47 = vpop.permute.xlu0 %1683 }
0x1b2e   : > { %1686 = vst.msk [vmem:[#allocation3] sm:$0x3] %vm1680_vm5, %v1684_v47 }
0x1b2f PF: > { %s3220_s28 = sld [smem:[#allocation24_spill]]  ;;  %s3221_s20 = sld [smem:[#allocation25_spill]] }
0x1b30   : > { %p3223_p4 = scmp.ge.s32.totalorder %s2506_s30, 2 }
0x1b35   : > { %s1717_s15 = sand.u32 1, %s3220_s28   ;;  %p3222_p1 = scmp.ne.s32.totalorder %s3221_s20, 0 }
0x1b36   : > { %s1718_s22 = scalar_lea.sflag [#allocation9], %s1717_s15 }
0x1b37   : > { %p2134_p0 = pnand %p3223_p4, %p3222_p1 }
0x1b39   : > { %2481 = dma.done.wait (!%p2134_p0), %s1718_s22, 128  }
0x1b3a   : > { %2483 = vsyncadd (!%p2134_p0), %s1718_s22, 4294967168  ;;  %s34_s30 = sadd.s32 1, %s2506_s30   ;;  %s3224_s26 = smov %s2490_s0 }
0x1b3b   : > { %p31_p8 = scmp.ge.s32.totalorder %s34_s30, 4   ;;  %s3225_s0 = smov %s2494_s27 }
0x1b3c   : > { %s3226_s27 = smov %s2779_s18  ;;  %s3227_s28 = smov %s2502_s29 }
0x1b3d   : > { %s3228_s29 = smov %s3230_s2  ;;  %33 = sbr.rel (!%p31_p8) target bundleno = 24 (0x18), region = 175 }
0x1b44   :  { %1723 = vsyncpa [#allocation8], 1 }
0x1b45   :  { %1725 = vsyncpa [#allocation8 + $0x1], 1 }
0x1b46   :  { %1726 = vsyncpa [#allocation11], 1 }
0x1b47   :  { %1727 = vsyncpa [#allocation15], 1 }
0x1b48   :  { %1728 = vsyncpa [#allocation9], 1 }
0x1b49   :  { %1730 = vsyncpa [#allocation9 + $0x1], 1 }

</bundles_post_ra>
